<compile_context>
chip_gen: v7x
topology: tpu7x:2x2x1
jax: 0.10.0
libtpu: 0.0.40
codegen_flags: <defaults>
</compile_context>

<pallas_src>
import jax
import jax.numpy as jnp
from jax import lax
from jax.experimental import pallas as pl
from jax.experimental.pallas import tpu as pltpu


# ---------------------------------------------------------------------------
# Fused conv3x3 (BN scale folded into weights) + bias + ReLU (+ 2x2 maxpool)
# ---------------------------------------------------------------------------

def _make_conv_kernel(H, W, cin, cout, pool):
    """Kernel factory; one image per grid step.

    x_ref : [H+2, W+2, cin]  zero-padded NHWC input (batch dim squeezed)
    w_ref : [9*cin, cout]    (kh, kw, ci)-major weights, BN scale folded
    b_ref : [1, cout]        folded BN bias (f32)
    o_ref : [Ho, Wo, cout]   output (pooled if pool=True)
    """
    Wo = W // 2

    def kernel(x_ref, w_ref, b_ref, o_ref):
        bias = b_ref[...]                                       # [1, cout] f32

        def conv_row(r):
            """One conv output row r (pre-bias, f32): [W, cout]."""
            if cin == 1:
                # VPU broadcast-FMA path (a [W,9]@[9,cout] matmul would waste
                # the MXU contraction dim and load bandwidth).
                acc = jnp.zeros((W, cout), jnp.float32)
                t = 0
                for kh in range(3):
                    row = x_ref[r + kh].astype(jnp.float32)     # [W+2, 1]
                    for kw in range(3):
                        acc = acc + row[kw:kw + W, :] * w_ref[t:t + 1, :]
                        t += 1
                return acc
            # In-kernel im2col for this row: 9 shifted taps, lane-concatenated.
            taps = []
            for kh in range(3):
                row = x_ref[r + kh]                             # [W+2, cin]
                for kw in range(3):
                    taps.append(row[kw:kw + W, :])              # [W, cin]
            a = jnp.concatenate(taps, axis=-1)                  # [W, 9*cin]
            return jnp.dot(a, w_ref[...],
                           preferred_element_type=jnp.float32)  # [W, cout]

        if pool:
            # 0/1 selection matrices picking even/odd output columns
            # (loop-invariant; hoisted out of the row loop).
            ri = lax.broadcasted_iota(jnp.int32, (Wo, W), 0)
            ci = lax.broadcasted_iota(jnp.int32, (Wo, W), 1)
            s_even = (ci == 2 * ri).astype(jnp.float32)
            s_odd = (ci == 2 * ri + 1).astype(jnp.float32)

            def body(ho, carry):
                rowmax = jnp.maximum(conv_row(2 * ho), conv_row(2 * ho + 1))
                even = jnp.dot(s_even, rowmax,
                               preferred_element_type=jnp.float32)
                odd = jnp.dot(s_odd, rowmax,
                              preferred_element_type=jnp.float32)
                pooled = jnp.maximum(even, odd)                 # [Wo, cout]
                # max commutes with (+bias) and ReLU, so this matches
                # conv -> BN -> ReLU -> pool.
                y = jnp.maximum(pooled + bias, 0.0)
                o_ref[ho] = y.astype(o_ref.dtype)
                return carry

            lax.fori_loop(0, H // 2, body, 0)
        else:
            def body(h, carry):
                y = jnp.maximum(conv_row(h) + bias, 0.0)        # [W, cout]
                o_ref[h] = y.astype(o_ref.dtype)
                return carry

            lax.fori_loop(0, H, body, 0)

    return kernel


def conv3x3_bn_relu(x_pad, w_mat, bias, *, pool, out_dtype=jnp.bfloat16):
    """x_pad: [N, H+2, W+2, cin] (already zero-padded).  Returns NHWC output."""
    N, Hp, Wp, cin = x_pad.shape
    H, W = Hp - 2, Wp - 2
    cout = w_mat.shape[-1]
    Ho, Wo = (H // 2, W // 2) if pool else (H, W)

    flops = 2 * N * H * W * 9 * cin * cout
    bytes_accessed = (x_pad.size * x_pad.dtype.itemsize
                      + w_mat.size * w_mat.dtype.itemsize
                      + bias.size * bias.dtype.itemsize
                      + N * Ho * Wo * cout * jnp.dtype(out_dtype).itemsize)

    return pl.pallas_call(
        _make_conv_kernel(H, W, cin, cout, pool),
        grid=(N,),
        out_shape=jax.ShapeDtypeStruct((N, Ho, Wo, cout), out_dtype),
        in_specs=[
            pl.BlockSpec((None, Hp, Wp, cin), lambda n: (n, 0, 0, 0)),
            pl.BlockSpec(w_mat.shape, lambda n: (0, 0)),
            pl.BlockSpec((1, cout), lambda n: (0, 0)),
        ],
        out_specs=pl.BlockSpec((None, Ho, Wo, cout), lambda n: (n, 0, 0, 0)),
        compiler_params=pltpu.CompilerParams(
            dimension_semantics=("parallel",)),
        cost_estimate=pl.CostEstimate(flops=flops, transcendentals=0,
                                      bytes_accessed=bytes_accessed),
    )(x_pad, w_mat, bias)


# ---------------------------------------------------------------------------
# Fused classifier: fc1 (BN scale folded) + bias + ReLU + fc2 + log_softmax
# ---------------------------------------------------------------------------

def _fc_head_kernel(x_ref, w1_ref, b1_ref, w2_ref, o_ref):
    h = jnp.dot(x_ref[...], w1_ref[...], preferred_element_type=jnp.float32)
    h = jnp.maximum(h + b1_ref[...], 0.0)                       # [tile, 20] f32
    logits = jnp.dot(h, w2_ref[...], preferred_element_type=jnp.float32)
    m = jnp.max(logits, axis=-1, keepdims=True)
    z = logits - m
    lse = jnp.log(jnp.sum(jnp.exp(z), axis=-1, keepdims=True))
    o_ref[...] = z - lse


def fc_head(flat, w1, b1, w2):
    M, K = flat.shape
    n_hidden = w1.shape[1]
    n_out = w2.shape[1]
    tile = M if M <= 256 else 256
    grid = (pl.cdiv(M, tile),)

    flops = 2 * M * (K * n_hidden + n_hidden * n_out)
    bytes_accessed = (flat.size * flat.dtype.itemsize
                      + w1.size * w1.dtype.itemsize
                      + b1.size * b1.dtype.itemsize
                      + w2.size * w2.dtype.itemsize
                      + M * n_out * 4)

    return pl.pallas_call(
        _fc_head_kernel,
        grid=grid,
        out_shape=jax.ShapeDtypeStruct((M, n_out), jnp.float32),
        in_specs=[
            pl.BlockSpec((tile, K), lambda i: (i, 0)),
            pl.BlockSpec((K, n_hidden), lambda i: (0, 0)),
            pl.BlockSpec((1, n_hidden), lambda i: (0, 0)),
            pl.BlockSpec((n_hidden, n_out), lambda i: (0, 0)),
        ],
        out_specs=pl.BlockSpec((tile, n_out), lambda i: (i, 0)),
        compiler_params=pltpu.CompilerParams(
            dimension_semantics=("parallel",)),
        cost_estimate=pl.CostEstimate(flops=flops, transcendentals=M * n_out,
                                      bytes_accessed=bytes_accessed),
    )(flat, w1, b1, w2)


# ---------------------------------------------------------------------------
# Parameter prep (offline): BN folding, weight reordering, dtype casts
# ---------------------------------------------------------------------------

def _fold_bn(gamma, beta, mean, var, eps=1e-5):
    scale = gamma / jnp.sqrt(var + eps)
    return scale, beta - mean * scale


def make_raw_params(key):
    def bn_params(k, n):
        k1, k2, k3, k4 = jax.random.split(k, 4)
        return (jax.random.uniform(k1, (n,), jnp.float32, 0.5, 1.5),   # gamma
                0.1 * jax.random.normal(k2, (n,), jnp.float32),        # beta
                0.1 * jax.random.normal(k3, (n,), jnp.float32),        # mean
                jax.random.uniform(k4, (n,), jnp.float32, 0.5, 1.5))   # var

    ks = jax.random.split(key, 11)
    return {
        "conv1_w": 0.1 * jax.random.normal(ks[0], (32, 1, 3, 3), jnp.float32),
        "bn1": bn_params(ks[1], 32),
        "conv2_w": 0.1 * jax.random.normal(ks[2], (32, 32, 3, 3), jnp.float32),
        "bn2": bn_params(ks[3], 32),
        "conv3_w": 0.1 * jax.random.normal(ks[4], (32, 32, 3, 3), jnp.float32),
        "bn3": bn_params(ks[5], 32),
        "conv4_w": 0.1 * jax.random.normal(ks[6], (32, 32, 3, 3), jnp.float32),
        "bn4": bn_params(ks[7], 32),
        "fc1_w": 0.05 * jax.random.normal(ks[8], (20, 32 * 7 * 7), jnp.float32),
        "bn_fc": bn_params(ks[9], 20),
        "fc2_w": 0.1 * jax.random.normal(ks[10], (10, 20), jnp.float32),
    }


def prepare_params(raw):
    p = {}

    def conv_prep(w_oihw, bn, to_dtype):
        scale, bias = _fold_bn(*bn)
        cout, cin = w_oihw.shape[0], w_oihw.shape[1]
        # OIHW -> [(kh, kw, ci), co], BN scale folded into the output columns.
        w = jnp.transpose(w_oihw, (2, 3, 1, 0)).reshape(9 * cin, cout)
        w = w * scale[None, :]
        return w.astype(to_dtype), bias.reshape(1, cout).astype(jnp.float32)

    p["w1"], p["b1"] = conv_prep(raw["conv1_w"], raw["bn1"], jnp.float32)  # VPU path
    p["w2"], p["b2"] = conv_prep(raw["conv2_w"], raw["bn2"], jnp.bfloat16)
    p["w3"], p["b3"] = conv_prep(raw["conv3_w"], raw["bn3"], jnp.bfloat16)
    p["w4"], p["b4"] = conv_prep(raw["conv4_w"], raw["bn4"], jnp.bfloat16)

    # fc1: permute columns from PyTorch NCHW flatten (c,h,w) to NHWC flatten
    # (h,w,c), fold BatchNorm1d scale, transpose to [1568, 20].
    scale, bias = _fold_bn(*raw["bn_fc"])
    w1 = raw["fc1_w"].reshape(20, 32, 7, 7).transpose(0, 2, 3, 1).reshape(20, 32 * 7 * 7)
    w1 = (w1 * scale[:, None]).T
    p["fc1_w"] = w1.astype(jnp.bfloat16)
    p["fc1_b"] = bias.reshape(1, 20).astype(jnp.float32)
    p["fc2_w"] = raw["fc2_w"].T.astype(jnp.float32)            # [20, 10]
    return p


# ---------------------------------------------------------------------------
# Forward pass
# ---------------------------------------------------------------------------

def _pad_hw(x):
    return jnp.pad(x, ((0, 0), (1, 1), (1, 1), (0, 0)))


def forward(x_nchw, p):
    x = jnp.transpose(x_nchw, (0, 2, 3, 1))                    # [N, 28, 28, 1] f32
    N = x.shape[0]

    x = conv3x3_bn_relu(_pad_hw(x), p["w1"], p["b1"], pool=True)    # [N,14,14,32]
    x = conv3x3_bn_relu(_pad_hw(x), p["w2"], p["b2"], pool=False)   # [N,14,14,32]
    x = conv3x3_bn_relu(_pad_hw(x), p["w3"], p["b3"], pool=True)    # [N, 7, 7,32]
    x = conv3x3_bn_relu(_pad_hw(x), p["w4"], p["b4"], pool=False)   # [N, 7, 7,32]

    flat = x.reshape(N, 7 * 7 * 32)          # NHWC flatten; fc1_w pre-permuted
    return fc_head(flat, p["fc1_w"], p["fc1_b"], p["fc2_w"])   # [N,10] log-probs


if __name__ == "__main__":
    key = jax.random.PRNGKey(0)
    kx, kp = jax.random.split(key)
    # MNIST-like input implied by the 32*7*7 flatten: [batch=2, 1, 28, 28]
    x = jax.random.normal(kx, (2, 1, 28, 28), jnp.float32)
    params = prepare_params(make_raw_params(kp))

    out = jax.jit(forward)(x, params)
    jax.block_until_ready(out)

    assert out.shape == (2, 10)
    assert bool(jnp.all(jnp.isfinite(out)))
    # rows of log_softmax should (exp-)sum to ~1
    assert bool(jnp.allclose(jnp.exp(out).sum(axis=1), 1.0, atol=1e-3))
    print("KERNEL_OK")
</pallas_src>

<mosaic_0001>
module attributes {stable_mosaic.version = 11 : i64} {
  func.func @kernel(%arg0: i32, %arg1: memref<1x30x30x1xf32, #tpu.memory_space<vmem>>, %arg2: memref<9x32xf32, #tpu.memory_space<vmem>>, %arg3: memref<1x32xf32, #tpu.memory_space<vmem>>, %arg4: memref<1x14x14x32xbf16, #tpu.memory_space<vmem>>) attributes {dimension_semantics = [#tpu.dimension_semantics<parallel>], iteration_bounds = array<i64: 2>, scalar_prefetch = 0 : i64, scratch_operands = 0 : i64, tpu.core_type = #tpu.core_type<tc>, window_params = [{transform_indices = @transform_0, window_bounds = array<i64: 1, 30, 30, 1>}, {pipeline_mode = #tpu.pipeline_mode<synchronous>, transform_indices = @transform_1, window_bounds = array<i64: 9, 32>}, {pipeline_mode = #tpu.pipeline_mode<synchronous>, transform_indices = @transform_2, window_bounds = array<i64: 1, 32>}, {transform_indices = @transform_3, window_bounds = array<i64: 1, 14, 14, 32>}]} {
    %c0 = arith.constant 0 : index
    %c0_0 = arith.constant 0 : index
    %0 = vector.load %arg3[%c0, %c0_0] : memref<1x32xf32, #tpu.memory_space<vmem>>, vector<1x32xf32>
    %1 = tpu.iota {dimensions = array<i32: 0>} : vector<14x28xi32>
    %2 = tpu.iota {dimensions = array<i32: 1>} : vector<14x28xi32>
    %c2_i32 = arith.constant 2 : i32
    %3 = vector.broadcast %c2_i32 : i32 to vector<14x28xi32>
    %4 = arith.muli %3, %1 : vector<14x28xi32>
    %5 = arith.cmpi eq, %2, %4 : vector<14x28xi32>
    %6 = arith.extui %5 : vector<14x28xi1> to vector<14x28xi32>
    %7 = arith.sitofp %6 : vector<14x28xi32> to vector<14x28xf32>
    %c2_i32_1 = arith.constant 2 : i32
    %8 = vector.broadcast %c2_i32_1 : i32 to vector<14x28xi32>
    %9 = arith.muli %8, %1 : vector<14x28xi32>
    %c1_i32 = arith.constant 1 : i32
    %10 = vector.broadcast %c1_i32 : i32 to vector<14x28xi32>
    %11 = arith.addi %9, %10 : vector<14x28xi32>
    %12 = arith.cmpi eq, %2, %11 : vector<14x28xi32>
    %13 = arith.extui %12 : vector<14x28xi1> to vector<14x28xi32>
    %14 = arith.sitofp %13 : vector<14x28xi32> to vector<14x28xf32>
    %c0_i32 = arith.constant 0 : i32
    %c14_i32 = arith.constant 14 : i32
    %15 = arith.addi %c0_i32, %c14_i32 : i32
    %c1_i32_2 = arith.constant 1 : i32
    scf.for %arg5 = %c0_i32 to %15 step %c1_i32_2  : i32 {
      %c2_i32_4 = arith.constant 2 : i32
      %16 = arith.muli %c2_i32_4, %arg5 : i32
      %cst = arith.constant 0.000000e+00 : f32
      %17 = vector.broadcast %cst : f32 to vector<28x32xf32>
      %c0_i32_5 = arith.constant 0 : i32
      %18 = arith.addi %16, %c0_i32_5 : i32
      %c0_6 = arith.constant 0 : index
      %19 = arith.index_cast %18 : i32 to index
      %c0_7 = arith.constant 0 : index
      %c0_8 = arith.constant 0 : index
      %20 = vector.load %arg1[%c0_6, %19, %c0_7, %c0_8] : memref<1x30x30x1xf32, #tpu.memory_space<vmem>>, vector<1x1x30x1xf32>
      %21 = vector.shape_cast %20 : vector<1x1x30x1xf32> to vector<30x1xf32>
      %22 = vector.extract_strided_slice %21 {offsets = [0, 0], sizes = [28, 1], strides = [1, 1]} : vector<30x1xf32> to vector<28x1xf32>
      %c0_9 = arith.constant 0 : index
      %c0_10 = arith.constant 0 : index
      %23 = vector.load %arg2[%c0_9, %c0_10] : memref<9x32xf32, #tpu.memory_space<vmem>>, vector<1x32xf32>
      %24 = vector.broadcast %22 : vector<28x1xf32> to vector<28x32xf32>
      %25 = vector.broadcast %23 : vector<1x32xf32> to vector<28x32xf32>
      %26 = arith.mulf %24, %25 : vector<28x32xf32>
      %27 = arith.addf %17, %26 : vector<28x32xf32>
      %28 = vector.extract_strided_slice %21 {offsets = [1, 0], sizes = [28, 1], strides = [1, 1]} : vector<30x1xf32> to vector<28x1xf32>
      %c1 = arith.constant 1 : index
      %c0_11 = arith.constant 0 : index
      %29 = vector.load %arg2[%c1, %c0_11] : memref<9x32xf32, #tpu.memory_space<vmem>>, vector<1x32xf32>
      %30 = vector.broadcast %28 : vector<28x1xf32> to vector<28x32xf32>
      %31 = vector.broadcast %29 : vector<1x32xf32> to vector<28x32xf32>
      %32 = arith.mulf %30, %31 : vector<28x32xf32>
      %33 = arith.addf %27, %32 : vector<28x32xf32>
      %34 = vector.extract_strided_slice %21 {offsets = [2, 0], sizes = [28, 1], strides = [1, 1]} : vector<30x1xf32> to vector<28x1xf32>
      %c2 = arith.constant 2 : index
      %c0_12 = arith.constant 0 : index
      %35 = vector.load %arg2[%c2, %c0_12] : memref<9x32xf32, #tpu.memory_space<vmem>>, vector<1x32xf32>
      %36 = vector.broadcast %34 : vector<28x1xf32> to vector<28x32xf32>
      %37 = vector.broadcast %35 : vector<1x32xf32> to vector<28x32xf32>
      %38 = arith.mulf %36, %37 : vector<28x32xf32>
      %39 = arith.addf %33, %38 : vector<28x32xf32>
      %c1_i32_13 = arith.constant 1 : i32
      %40 = arith.addi %16, %c1_i32_13 : i32
      %c0_14 = arith.constant 0 : index
      %41 = arith.index_cast %40 : i32 to index
      %c0_15 = arith.constant 0 : index
      %c0_16 = arith.constant 0 : index
      %42 = vector.load %arg1[%c0_14, %41, %c0_15, %c0_16] : memref<1x30x30x1xf32, #tpu.memory_space<vmem>>, vector<1x1x30x1xf32>
      %43 = vector.shape_cast %42 : vector<1x1x30x1xf32> to vector<30x1xf32>
      %44 = vector.extract_strided_slice %43 {offsets = [0, 0], sizes = [28, 1], strides = [1, 1]} : vector<30x1xf32> to vector<28x1xf32>
      %c3 = arith.constant 3 : index
      %c0_17 = arith.constant 0 : index
      %45 = vector.load %arg2[%c3, %c0_17] : memref<9x32xf32, #tpu.memory_space<vmem>>, vector<1x32xf32>
      %46 = vector.broadcast %44 : vector<28x1xf32> to vector<28x32xf32>
      %47 = vector.broadcast %45 : vector<1x32xf32> to vector<28x32xf32>
      %48 = arith.mulf %46, %47 : vector<28x32xf32>
      %49 = arith.addf %39, %48 : vector<28x32xf32>
      %50 = vector.extract_strided_slice %43 {offsets = [1, 0], sizes = [28, 1], strides = [1, 1]} : vector<30x1xf32> to vector<28x1xf32>
      %c4 = arith.constant 4 : index
      %c0_18 = arith.constant 0 : index
      %51 = vector.load %arg2[%c4, %c0_18] : memref<9x32xf32, #tpu.memory_space<vmem>>, vector<1x32xf32>
      %52 = vector.broadcast %50 : vector<28x1xf32> to vector<28x32xf32>
      %53 = vector.broadcast %51 : vector<1x32xf32> to vector<28x32xf32>
      %54 = arith.mulf %52, %53 : vector<28x32xf32>
      %55 = arith.addf %49, %54 : vector<28x32xf32>
      %56 = vector.extract_strided_slice %43 {offsets = [2, 0], sizes = [28, 1], strides = [1, 1]} : vector<30x1xf32> to vector<28x1xf32>
      %c5 = arith.constant 5 : index
      %c0_19 = arith.constant 0 : index
      %57 = vector.load %arg2[%c5, %c0_19] : memref<9x32xf32, #tpu.memory_space<vmem>>, vector<1x32xf32>
      %58 = vector.broadcast %56 : vector<28x1xf32> to vector<28x32xf32>
      %59 = vector.broadcast %57 : vector<1x32xf32> to vector<28x32xf32>
      %60 = arith.mulf %58, %59 : vector<28x32xf32>
      %61 = arith.addf %55, %60 : vector<28x32xf32>
      %c2_i32_20 = arith.constant 2 : i32
      %62 = arith.addi %16, %c2_i32_20 : i32
      %c0_21 = arith.constant 0 : index
      %63 = arith.index_cast %62 : i32 to index
      %c0_22 = arith.constant 0 : index
      %c0_23 = arith.constant 0 : index
      %64 = vector.load %arg1[%c0_21, %63, %c0_22, %c0_23] : memref<1x30x30x1xf32, #tpu.memory_space<vmem>>, vector<1x1x30x1xf32>
      %65 = vector.shape_cast %64 : vector<1x1x30x1xf32> to vector<30x1xf32>
      %66 = vector.extract_strided_slice %65 {offsets = [0, 0], sizes = [28, 1], strides = [1, 1]} : vector<30x1xf32> to vector<28x1xf32>
      %c6 = arith.constant 6 : index
      %c0_24 = arith.constant 0 : index
      %67 = vector.load %arg2[%c6, %c0_24] : memref<9x32xf32, #tpu.memory_space<vmem>>, vector<1x32xf32>
      %68 = vector.broadcast %66 : vector<28x1xf32> to vector<28x32xf32>
      %69 = vector.broadcast %67 : vector<1x32xf32> to vector<28x32xf32>
      %70 = arith.mulf %68, %69 : vector<28x32xf32>
      %71 = arith.addf %61, %70 : vector<28x32xf32>
      %72 = vector.extract_strided_slice %65 {offsets = [1, 0], sizes = [28, 1], strides = [1, 1]} : vector<30x1xf32> to vector<28x1xf32>
      %c7 = arith.constant 7 : index
      %c0_25 = arith.constant 0 : index
      %73 = vector.load %arg2[%c7, %c0_25] : memref<9x32xf32, #tpu.memory_space<vmem>>, vector<1x32xf32>
      %74 = vector.broadcast %72 : vector<28x1xf32> to vector<28x32xf32>
      %75 = vector.broadcast %73 : vector<1x32xf32> to vector<28x32xf32>
      %76 = arith.mulf %74, %75 : vector<28x32xf32>
      %77 = arith.addf %71, %76 : vector<28x32xf32>
      %78 = vector.extract_strided_slice %65 {offsets = [2, 0], sizes = [28, 1], strides = [1, 1]} : vector<30x1xf32> to vector<28x1xf32>
      %c8 = arith.constant 8 : index
      %c0_26 = arith.constant 0 : index
      %79 = vector.load %arg2[%c8, %c0_26] : memref<9x32xf32, #tpu.memory_space<vmem>>, vector<1x32xf32>
      %80 = vector.broadcast %78 : vector<28x1xf32> to vector<28x32xf32>
      %81 = vector.broadcast %79 : vector<1x32xf32> to vector<28x32xf32>
      %82 = arith.mulf %80, %81 : vector<28x32xf32>
      %83 = arith.addf %77, %82 : vector<28x32xf32>
      %c2_i32_27 = arith.constant 2 : i32
      %84 = arith.muli %c2_i32_27, %arg5 : i32
      %c1_i32_28 = arith.constant 1 : i32
      %85 = arith.addi %84, %c1_i32_28 : i32
      %cst_29 = arith.constant 0.000000e+00 : f32
      %86 = vector.broadcast %cst_29 : f32 to vector<28x32xf32>
      %c0_i32_30 = arith.constant 0 : i32
      %87 = arith.addi %85, %c0_i32_30 : i32
      %c0_31 = arith.constant 0 : index
      %88 = arith.index_cast %87 : i32 to index
      %c0_32 = arith.constant 0 : index
      %c0_33 = arith.constant 0 : index
      %89 = vector.load %arg1[%c0_31, %88, %c0_32, %c0_33] : memref<1x30x30x1xf32, #tpu.memory_space<vmem>>, vector<1x1x30x1xf32>
      %90 = vector.shape_cast %89 : vector<1x1x30x1xf32> to vector<30x1xf32>
      %91 = vector.extract_strided_slice %90 {offsets = [0, 0], sizes = [28, 1], strides = [1, 1]} : vector<30x1xf32> to vector<28x1xf32>
      %c0_34 = arith.constant 0 : index
      %c0_35 = arith.constant 0 : index
      %92 = vector.load %arg2[%c0_34, %c0_35] : memref<9x32xf32, #tpu.memory_space<vmem>>, vector<1x32xf32>
      %93 = vector.broadcast %91 : vector<28x1xf32> to vector<28x32xf32>
      %94 = vector.broadcast %92 : vector<1x32xf32> to vector<28x32xf32>
      %95 = arith.mulf %93, %94 : vector<28x32xf32>
      %96 = arith.addf %86, %95 : vector<28x32xf32>
      %97 = vector.extract_strided_slice %90 {offsets = [1, 0], sizes = [28, 1], strides = [1, 1]} : vector<30x1xf32> to vector<28x1xf32>
      %c1_36 = arith.constant 1 : index
      %c0_37 = arith.constant 0 : index
      %98 = vector.load %arg2[%c1_36, %c0_37] : memref<9x32xf32, #tpu.memory_space<vmem>>, vector<1x32xf32>
      %99 = vector.broadcast %97 : vector<28x1xf32> to vector<28x32xf32>
      %100 = vector.broadcast %98 : vector<1x32xf32> to vector<28x32xf32>
      %101 = arith.mulf %99, %100 : vector<28x32xf32>
      %102 = arith.addf %96, %101 : vector<28x32xf32>
      %103 = vector.extract_strided_slice %90 {offsets = [2, 0], sizes = [28, 1], strides = [1, 1]} : vector<30x1xf32> to vector<28x1xf32>
      %c2_38 = arith.constant 2 : index
      %c0_39 = arith.constant 0 : index
      %104 = vector.load %arg2[%c2_38, %c0_39] : memref<9x32xf32, #tpu.memory_space<vmem>>, vector<1x32xf32>
      %105 = vector.broadcast %103 : vector<28x1xf32> to vector<28x32xf32>
      %106 = vector.broadcast %104 : vector<1x32xf32> to vector<28x32xf32>
      %107 = arith.mulf %105, %106 : vector<28x32xf32>
      %108 = arith.addf %102, %107 : vector<28x32xf32>
      %c1_i32_40 = arith.constant 1 : i32
      %109 = arith.addi %85, %c1_i32_40 : i32
      %c0_41 = arith.constant 0 : index
      %110 = arith.index_cast %109 : i32 to index
      %c0_42 = arith.constant 0 : index
      %c0_43 = arith.constant 0 : index
      %111 = vector.load %arg1[%c0_41, %110, %c0_42, %c0_43] : memref<1x30x30x1xf32, #tpu.memory_space<vmem>>, vector<1x1x30x1xf32>
      %112 = vector.shape_cast %111 : vector<1x1x30x1xf32> to vector<30x1xf32>
      %113 = vector.extract_strided_slice %112 {offsets = [0, 0], sizes = [28, 1], strides = [1, 1]} : vector<30x1xf32> to vector<28x1xf32>
      %c3_44 = arith.constant 3 : index
      %c0_45 = arith.constant 0 : index
      %114 = vector.load %arg2[%c3_44, %c0_45] : memref<9x32xf32, #tpu.memory_space<vmem>>, vector<1x32xf32>
      %115 = vector.broadcast %113 : vector<28x1xf32> to vector<28x32xf32>
      %116 = vector.broadcast %114 : vector<1x32xf32> to vector<28x32xf32>
      %117 = arith.mulf %115, %116 : vector<28x32xf32>
      %118 = arith.addf %108, %117 : vector<28x32xf32>
      %119 = vector.extract_strided_slice %112 {offsets = [1, 0], sizes = [28, 1], strides = [1, 1]} : vector<30x1xf32> to vector<28x1xf32>
      %c4_46 = arith.constant 4 : index
      %c0_47 = arith.constant 0 : index
      %120 = vector.load %arg2[%c4_46, %c0_47] : memref<9x32xf32, #tpu.memory_space<vmem>>, vector<1x32xf32>
      %121 = vector.broadcast %119 : vector<28x1xf32> to vector<28x32xf32>
      %122 = vector.broadcast %120 : vector<1x32xf32> to vector<28x32xf32>
      %123 = arith.mulf %121, %122 : vector<28x32xf32>
      %124 = arith.addf %118, %123 : vector<28x32xf32>
      %125 = vector.extract_strided_slice %112 {offsets = [2, 0], sizes = [28, 1], strides = [1, 1]} : vector<30x1xf32> to vector<28x1xf32>
      %c5_48 = arith.constant 5 : index
      %c0_49 = arith.constant 0 : index
      %126 = vector.load %arg2[%c5_48, %c0_49] : memref<9x32xf32, #tpu.memory_space<vmem>>, vector<1x32xf32>
      %127 = vector.broadcast %125 : vector<28x1xf32> to vector<28x32xf32>
      %128 = vector.broadcast %126 : vector<1x32xf32> to vector<28x32xf32>
      %129 = arith.mulf %127, %128 : vector<28x32xf32>
      %130 = arith.addf %124, %129 : vector<28x32xf32>
      %c2_i32_50 = arith.constant 2 : i32
      %131 = arith.addi %85, %c2_i32_50 : i32
      %c0_51 = arith.constant 0 : index
      %132 = arith.index_cast %131 : i32 to index
      %c0_52 = arith.constant 0 : index
      %c0_53 = arith.constant 0 : index
      %133 = vector.load %arg1[%c0_51, %132, %c0_52, %c0_53] : memref<1x30x30x1xf32, #tpu.memory_space<vmem>>, vector<1x1x30x1xf32>
      %134 = vector.shape_cast %133 : vector<1x1x30x1xf32> to vector<30x1xf32>
      %135 = vector.extract_strided_slice %134 {offsets = [0, 0], sizes = [28, 1], strides = [1, 1]} : vector<30x1xf32> to vector<28x1xf32>
      %c6_54 = arith.constant 6 : index
      %c0_55 = arith.constant 0 : index
      %136 = vector.load %arg2[%c6_54, %c0_55] : memref<9x32xf32, #tpu.memory_space<vmem>>, vector<1x32xf32>
      %137 = vector.broadcast %135 : vector<28x1xf32> to vector<28x32xf32>
      %138 = vector.broadcast %136 : vector<1x32xf32> to vector<28x32xf32>
      %139 = arith.mulf %137, %138 : vector<28x32xf32>
      %140 = arith.addf %130, %139 : vector<28x32xf32>
      %141 = vector.extract_strided_slice %134 {offsets = [1, 0], sizes = [28, 1], strides = [1, 1]} : vector<30x1xf32> to vector<28x1xf32>
      %c7_56 = arith.constant 7 : index
      %c0_57 = arith.constant 0 : index
      %142 = vector.load %arg2[%c7_56, %c0_57] : memref<9x32xf32, #tpu.memory_space<vmem>>, vector<1x32xf32>
      %143 = vector.broadcast %141 : vector<28x1xf32> to vector<28x32xf32>
      %144 = vector.broadcast %142 : vector<1x32xf32> to vector<28x32xf32>
      %145 = arith.mulf %143, %144 : vector<28x32xf32>
      %146 = arith.addf %140, %145 : vector<28x32xf32>
      %147 = vector.extract_strided_slice %134 {offsets = [2, 0], sizes = [28, 1], strides = [1, 1]} : vector<30x1xf32> to vector<28x1xf32>
      %c8_58 = arith.constant 8 : index
      %c0_59 = arith.constant 0 : index
      %148 = vector.load %arg2[%c8_58, %c0_59] : memref<9x32xf32, #tpu.memory_space<vmem>>, vector<1x32xf32>
      %149 = vector.broadcast %147 : vector<28x1xf32> to vector<28x32xf32>
      %150 = vector.broadcast %148 : vector<1x32xf32> to vector<28x32xf32>
      %151 = arith.mulf %149, %150 : vector<28x32xf32>
      %152 = arith.addf %146, %151 : vector<28x32xf32>
      %153 = arith.maximumf %83, %152 : vector<28x32xf32>
      %cst_60 = arith.constant dense<0.000000e+00> : vector<14x32xf32>
      %154 = tpu.matmul %7, %153, %cst_60 {dimension_numbers = #tpu.dot_dimension_numbers<[1], [0], [0], [1], [0, 0, 1, 1], [], []>} : vector<14x28xf32>, vector<28x32xf32>, vector<14x32xf32> -> vector<14x32xf32>
      %cst_61 = arith.constant dense<0.000000e+00> : vector<14x32xf32>
      %155 = tpu.matmul %14, %153, %cst_61 {dimension_numbers = #tpu.dot_dimension_numbers<[1], [0], [0], [1], [0, 0, 1, 1], [], []>} : vector<14x28xf32>, vector<28x32xf32>, vector<14x32xf32> -> vector<14x32xf32>
      %156 = arith.maximumf %154, %155 : vector<14x32xf32>
      %157 = vector.broadcast %0 : vector<1x32xf32> to vector<14x32xf32>
      %158 = arith.addf %156, %157 : vector<14x32xf32>
      %cst_62 = arith.constant 0.000000e+00 : f32
      %159 = vector.broadcast %cst_62 : f32 to vector<14x32xf32>
      %160 = arith.maximumf %158, %159 : vector<14x32xf32>
      %161 = arith.truncf %160 : vector<14x32xf32> to vector<14x32xbf16>
      %c0_63 = arith.constant 0 : index
      %162 = arith.index_cast %arg5 : i32 to index
      %c0_64 = arith.constant 0 : index
      %c0_65 = arith.constant 0 : index
      %163 = vector.load %arg4[%c0_63, %162, %c0_64, %c0_65] : memref<1x14x14x32xbf16, #tpu.memory_space<vmem>>, vector<1x1x14x32xbf16>
      %164 = vector.shape_cast %163 : vector<1x1x14x32xbf16> to vector<14x32xbf16>
      %165 = vector.shape_cast %161 : vector<14x32xbf16> to vector<1x1x14x32xbf16>
      tpu.vector_store %arg4[%c0_63, %162, %c0_64, %c0_65], %165 {strides = array<i32>} : memref<1x14x14x32xbf16, #tpu.memory_space<vmem>>, vector<1x1x14x32xbf16>,
    }
    %c14_i32_3 = arith.constant 14 : i32
    return
  }
  func.func @transform_0(%arg0: i32) -> (i32, i32, i32, i32) {
    %c0_i32 = arith.constant 0 : i32
    %c0_i32_0 = arith.constant 0 : i32
    %c0_i32_1 = arith.constant 0 : i32
    %c0_i32_2 = arith.constant 0 : i32
    return %arg0, %c0_i32, %c0_i32_0, %c0_i32_1 : i32, i32, i32, i32
  }
  func.func @transform_1(%arg0: i32) -> (i32, i32) {
    %c0_i32 = arith.constant 0 : i32
    %c0_i32_0 = arith.constant 0 : i32
    %c0_i32_1 = arith.constant 0 : i32
    return %c0_i32, %c0_i32_0 : i32, i32
  }
  func.func @transform_2(%arg0: i32) -> (i32, i32) {
    %c0_i32 = arith.constant 0 : i32
    %c0_i32_0 = arith.constant 0 : i32
    %c0_i32_1 = arith.constant 0 : i32
    return %c0_i32, %c0_i32_0 : i32, i32
  }
  func.func @transform_3(%arg0: i32) -> (i32, i32, i32, i32) {
    %c0_i32 = arith.constant 0 : i32
    %c0_i32_0 = arith.constant 0 : i32
    %c0_i32_1 = arith.constant 0 : i32
    %c0_i32_2 = arith.constant 0 : i32
    return %arg0, %c0_i32, %c0_i32_0, %c0_i32_1 : i32, i32, i32, i32
  }
}

module attributes {stable_mosaic.version = 11 : i64} {
  func.func @kernel(%arg0: i32, %arg1: memref<1x16x16x32xbf16, #tpu.memory_space<vmem>>, %arg2: memref<288x32xbf16, #tpu.memory_space<vmem>>, %arg3: memref<1x32xf32, #tpu.memory_space<vmem>>, %arg4: memref<1x14x14x32xbf16, #tpu.memory_space<vmem>>) attributes {dimension_semantics = [#tpu.dimension_semantics<parallel>], iteration_bounds = array<i64: 2>, scalar_prefetch = 0 : i64, scratch_operands = 0 : i64, tpu.core_type = #tpu.core_type<tc>, window_params = [{transform_indices = @transform_0, window_bounds = array<i64: 1, 16, 16, 32>}, {pipeline_mode = #tpu.pipeline_mode<synchronous>, transform_indices = @transform_1, window_bounds = array<i64: 288, 32>}, {pipeline_mode = #tpu.pipeline_mode<synchronous>, transform_indices = @transform_2, window_bounds = array<i64: 1, 32>}, {transform_indices = @transform_3, window_bounds = array<i64: 1, 14, 14, 32>}]} {
    %c0 = arith.constant 0 : index
    %c0_0 = arith.constant 0 : index
    %0 = vector.load %arg3[%c0, %c0_0] : memref<1x32xf32, #tpu.memory_space<vmem>>, vector<1x32xf32>
    %c0_i32 = arith.constant 0 : i32
    %c14_i32 = arith.constant 14 : i32
    %1 = arith.addi %c0_i32, %c14_i32 : i32
    %c1_i32 = arith.constant 1 : i32
    scf.for %arg5 = %c0_i32 to %1 step %c1_i32  : i32 {
      %c0_i32_2 = arith.constant 0 : i32
      %2 = arith.addi %arg5, %c0_i32_2 : i32
      %c0_3 = arith.constant 0 : index
      %3 = arith.index_cast %2 : i32 to index
      %c0_4 = arith.constant 0 : index
      %c0_5 = arith.constant 0 : index
      %4 = vector.load %arg1[%c0_3, %3, %c0_4, %c0_5] : memref<1x16x16x32xbf16, #tpu.memory_space<vmem>>, vector<1x1x16x32xbf16>
      %5 = vector.shape_cast %4 : vector<1x1x16x32xbf16> to vector<16x32xbf16>
      %6 = vector.extract_strided_slice %5 {offsets = [0, 0], sizes = [14, 32], strides = [1, 1]} : vector<16x32xbf16> to vector<14x32xbf16>
      %7 = vector.extract_strided_slice %5 {offsets = [1, 0], sizes = [14, 32], strides = [1, 1]} : vector<16x32xbf16> to vector<14x32xbf16>
      %8 = vector.extract_strided_slice %5 {offsets = [2, 0], sizes = [14, 32], strides = [1, 1]} : vector<16x32xbf16> to vector<14x32xbf16>
      %c1_i32_6 = arith.constant 1 : i32
      %9 = arith.addi %arg5, %c1_i32_6 : i32
      %c0_7 = arith.constant 0 : index
      %10 = arith.index_cast %9 : i32 to index
      %c0_8 = arith.constant 0 : index
      %c0_9 = arith.constant 0 : index
      %11 = vector.load %arg1[%c0_7, %10, %c0_8, %c0_9] : memref<1x16x16x32xbf16, #tpu.memory_space<vmem>>, vector<1x1x16x32xbf16>
      %12 = vector.shape_cast %11 : vector<1x1x16x32xbf16> to vector<16x32xbf16>
      %13 = vector.extract_strided_slice %12 {offsets = [0, 0], sizes = [14, 32], strides = [1, 1]} : vector<16x32xbf16> to vector<14x32xbf16>
      %14 = vector.extract_strided_slice %12 {offsets = [1, 0], sizes = [14, 32], strides = [1, 1]} : vector<16x32xbf16> to vector<14x32xbf16>
      %15 = vector.extract_strided_slice %12 {offsets = [2, 0], sizes = [14, 32], strides = [1, 1]} : vector<16x32xbf16> to vector<14x32xbf16>
      %c2_i32 = arith.constant 2 : i32
      %16 = arith.addi %arg5, %c2_i32 : i32
      %c0_10 = arith.constant 0 : index
      %17 = arith.index_cast %16 : i32 to index
      %c0_11 = arith.constant 0 : index
      %c0_12 = arith.constant 0 : index
      %18 = vector.load %arg1[%c0_10, %17, %c0_11, %c0_12] : memref<1x16x16x32xbf16, #tpu.memory_space<vmem>>, vector<1x1x16x32xbf16>
      %19 = vector.shape_cast %18 : vector<1x1x16x32xbf16> to vector<16x32xbf16>
      %20 = vector.extract_strided_slice %19 {offsets = [0, 0], sizes = [14, 32], strides = [1, 1]} : vector<16x32xbf16> to vector<14x32xbf16>
      %21 = vector.extract_strided_slice %19 {offsets = [1, 0], sizes = [14, 32], strides = [1, 1]} : vector<16x32xbf16> to vector<14x32xbf16>
      %22 = vector.extract_strided_slice %19 {offsets = [2, 0], sizes = [14, 32], strides = [1, 1]} : vector<16x32xbf16> to vector<14x32xbf16>
      %23 = tpu.concatenate %6, %7, %8, %13, %14, %15, %20, %21, %22 in 1 : vector<14x32xbf16>, vector<14x32xbf16>, vector<14x32xbf16>, vector<14x32xbf16>, vector<14x32xbf16>, vector<14x32xbf16>, vector<14x32xbf16>, vector<14x32xbf16>, vector<14x32xbf16> -> vector<14x288xbf16>
      %c0_13 = arith.constant 0 : index
      %c0_14 = arith.constant 0 : index
      %24 = vector.load %arg2[%c0_13, %c0_14] : memref<288x32xbf16, #tpu.memory_space<vmem>>, vector<288x32xbf16>
      %cst = arith.constant dense<0.000000e+00> : vector<14x32xf32>
      %25 = tpu.matmul %23, %24, %cst {dimension_numbers = #tpu.dot_dimension_numbers<[1], [0], [0], [1], [0, 0, 1, 1], [], []>} : vector<14x288xbf16>, vector<288x32xbf16>, vector<14x32xf32> -> vector<14x32xf32>
      %26 = vector.broadcast %0 : vector<1x32xf32> to vector<14x32xf32>
      %27 = arith.addf %25, %26 : vector<14x32xf32>
      %cst_15 = arith.constant 0.000000e+00 : f32
      %28 = vector.broadcast %cst_15 : f32 to vector<14x32xf32>
      %29 = arith.maximumf %27, %28 : vector<14x32xf32>
      %30 = arith.truncf %29 : vector<14x32xf32> to vector<14x32xbf16>
      %c0_16 = arith.constant 0 : index
      %31 = arith.index_cast %arg5 : i32 to index
      %c0_17 = arith.constant 0 : index
      %c0_18 = arith.constant 0 : index
      %32 = vector.load %arg4[%c0_16, %31, %c0_17, %c0_18] : memref<1x14x14x32xbf16, #tpu.memory_space<vmem>>, vector<1x1x14x32xbf16>
      %33 = vector.shape_cast %32 : vector<1x1x14x32xbf16> to vector<14x32xbf16>
      %34 = vector.shape_cast %30 : vector<14x32xbf16> to vector<1x1x14x32xbf16>
      tpu.vector_store %arg4[%c0_16, %31, %c0_17, %c0_18], %34 {strides = array<i32>} : memref<1x14x14x32xbf16, #tpu.memory_space<vmem>>, vector<1x1x14x32xbf16>,
    }
    %c14_i32_1 = arith.constant 14 : i32
    return
  }
  func.func @transform_0(%arg0: i32) -> (i32, i32, i32, i32) {
    %c0_i32 = arith.constant 0 : i32
    %c0_i32_0 = arith.constant 0 : i32
    %c0_i32_1 = arith.constant 0 : i32
    %c0_i32_2 = arith.constant 0 : i32
    return %arg0, %c0_i32, %c0_i32_0, %c0_i32_1 : i32, i32, i32, i32
  }
  func.func @transform_1(%arg0: i32) -> (i32, i32) {
    %c0_i32 = arith.constant 0 : i32
    %c0_i32_0 = arith.constant 0 : i32
    %c0_i32_1 = arith.constant 0 : i32
    return %c0_i32, %c0_i32_0 : i32, i32
  }
  func.func @transform_2(%arg0: i32) -> (i32, i32) {
    %c0_i32 = arith.constant 0 : i32
    %c0_i32_0 = arith.constant 0 : i32
    %c0_i32_1 = arith.constant 0 : i32
    return %c0_i32, %c0_i32_0 : i32, i32
  }
  func.func @transform_3(%arg0: i32) -> (i32, i32, i32, i32) {
    %c0_i32 = arith.constant 0 : i32
    %c0_i32_0 = arith.constant 0 : i32
    %c0_i32_1 = arith.constant 0 : i32
    %c0_i32_2 = arith.constant 0 : i32
    return %arg0, %c0_i32, %c0_i32_0, %c0_i32_1 : i32, i32, i32, i32
  }
}

module attributes {stable_mosaic.version = 11 : i64} {
  func.func @kernel(%arg0: i32, %arg1: memref<1x16x16x32xbf16, #tpu.memory_space<vmem>>, %arg2: memref<288x32xbf16, #tpu.memory_space<vmem>>, %arg3: memref<1x32xf32, #tpu.memory_space<vmem>>, %arg4: memref<1x7x7x32xbf16, #tpu.memory_space<vmem>>) attributes {dimension_semantics = [#tpu.dimension_semantics<parallel>], iteration_bounds = array<i64: 2>, scalar_prefetch = 0 : i64, scratch_operands = 0 : i64, tpu.core_type = #tpu.core_type<tc>, window_params = [{transform_indices = @transform_0, window_bounds = array<i64: 1, 16, 16, 32>}, {pipeline_mode = #tpu.pipeline_mode<synchronous>, transform_indices = @transform_1, window_bounds = array<i64: 288, 32>}, {pipeline_mode = #tpu.pipeline_mode<synchronous>, transform_indices = @transform_2, window_bounds = array<i64: 1, 32>}, {transform_indices = @transform_3, window_bounds = array<i64: 1, 7, 7, 32>}]} {
    %c0 = arith.constant 0 : index
    %c0_0 = arith.constant 0 : index
    %0 = vector.load %arg3[%c0, %c0_0] : memref<1x32xf32, #tpu.memory_space<vmem>>, vector<1x32xf32>
    %1 = tpu.iota {dimensions = array<i32: 0>} : vector<7x14xi32>
    %2 = tpu.iota {dimensions = array<i32: 1>} : vector<7x14xi32>
    %c2_i32 = arith.constant 2 : i32
    %3 = vector.broadcast %c2_i32 : i32 to vector<7x14xi32>
    %4 = arith.muli %3, %1 : vector<7x14xi32>
    %5 = arith.cmpi eq, %2, %4 : vector<7x14xi32>
    %6 = arith.extui %5 : vector<7x14xi1> to vector<7x14xi32>
    %7 = arith.sitofp %6 : vector<7x14xi32> to vector<7x14xf32>
    %c2_i32_1 = arith.constant 2 : i32
    %8 = vector.broadcast %c2_i32_1 : i32 to vector<7x14xi32>
    %9 = arith.muli %8, %1 : vector<7x14xi32>
    %c1_i32 = arith.constant 1 : i32
    %10 = vector.broadcast %c1_i32 : i32 to vector<7x14xi32>
    %11 = arith.addi %9, %10 : vector<7x14xi32>
    %12 = arith.cmpi eq, %2, %11 : vector<7x14xi32>
    %13 = arith.extui %12 : vector<7x14xi1> to vector<7x14xi32>
    %14 = arith.sitofp %13 : vector<7x14xi32> to vector<7x14xf32>
    %c0_i32 = arith.constant 0 : i32
    %c7_i32 = arith.constant 7 : i32
    %15 = arith.addi %c0_i32, %c7_i32 : i32
    %c1_i32_2 = arith.constant 1 : i32
    scf.for %arg5 = %c0_i32 to %15 step %c1_i32_2  : i32 {
      %c2_i32_4 = arith.constant 2 : i32
      %16 = arith.muli %c2_i32_4, %arg5 : i32
      %c0_i32_5 = arith.constant 0 : i32
      %17 = arith.addi %16, %c0_i32_5 : i32
      %c0_6 = arith.constant 0 : index
      %18 = arith.index_cast %17 : i32 to index
      %c0_7 = arith.constant 0 : index
      %c0_8 = arith.constant 0 : index
      %19 = vector.load %arg1[%c0_6, %18, %c0_7, %c0_8] : memref<1x16x16x32xbf16, #tpu.memory_space<vmem>>, vector<1x1x16x32xbf16>
      %20 = vector.shape_cast %19 : vector<1x1x16x32xbf16> to vector<16x32xbf16>
      %21 = vector.extract_strided_slice %20 {offsets = [0, 0], sizes = [14, 32], strides = [1, 1]} : vector<16x32xbf16> to vector<14x32xbf16>
      %22 = vector.extract_strided_slice %20 {offsets = [1, 0], sizes = [14, 32], strides = [1, 1]} : vector<16x32xbf16> to vector<14x32xbf16>
      %23 = vector.extract_strided_slice %20 {offsets = [2, 0], sizes = [14, 32], strides = [1, 1]} : vector<16x32xbf16> to vector<14x32xbf16>
      %c1_i32_9 = arith.constant 1 : i32
      %24 = arith.addi %16, %c1_i32_9 : i32
      %c0_10 = arith.constant 0 : index
      %25 = arith.index_cast %24 : i32 to index
      %c0_11 = arith.constant 0 : index
      %c0_12 = arith.constant 0 : index
      %26 = vector.load %arg1[%c0_10, %25, %c0_11, %c0_12] : memref<1x16x16x32xbf16, #tpu.memory_space<vmem>>, vector<1x1x16x32xbf16>
      %27 = vector.shape_cast %26 : vector<1x1x16x32xbf16> to vector<16x32xbf16>
      %28 = vector.extract_strided_slice %27 {offsets = [0, 0], sizes = [14, 32], strides = [1, 1]} : vector<16x32xbf16> to vector<14x32xbf16>
      %29 = vector.extract_strided_slice %27 {offsets = [1, 0], sizes = [14, 32], strides = [1, 1]} : vector<16x32xbf16> to vector<14x32xbf16>
      %30 = vector.extract_strided_slice %27 {offsets = [2, 0], sizes = [14, 32], strides = [1, 1]} : vector<16x32xbf16> to vector<14x32xbf16>
      %c2_i32_13 = arith.constant 2 : i32
      %31 = arith.addi %16, %c2_i32_13 : i32
      %c0_14 = arith.constant 0 : index
      %32 = arith.index_cast %31 : i32 to index
      %c0_15 = arith.constant 0 : index
      %c0_16 = arith.constant 0 : index
      %33 = vector.load %arg1[%c0_14, %32, %c0_15, %c0_16] : memref<1x16x16x32xbf16, #tpu.memory_space<vmem>>, vector<1x1x16x32xbf16>
      %34 = vector.shape_cast %33 : vector<1x1x16x32xbf16> to vector<16x32xbf16>
      %35 = vector.extract_strided_slice %34 {offsets = [0, 0], sizes = [14, 32], strides = [1, 1]} : vector<16x32xbf16> to vector<14x32xbf16>
      %36 = vector.extract_strided_slice %34 {offsets = [1, 0], sizes = [14, 32], strides = [1, 1]} : vector<16x32xbf16> to vector<14x32xbf16>
      %37 = vector.extract_strided_slice %34 {offsets = [2, 0], sizes = [14, 32], strides = [1, 1]} : vector<16x32xbf16> to vector<14x32xbf16>
      %38 = tpu.concatenate %21, %22, %23, %28, %29, %30, %35, %36, %37 in 1 : vector<14x32xbf16>, vector<14x32xbf16>, vector<14x32xbf16>, vector<14x32xbf16>, vector<14x32xbf16>, vector<14x32xbf16>, vector<14x32xbf16>, vector<14x32xbf16>, vector<14x32xbf16> -> vector<14x288xbf16>
      %c0_17 = arith.constant 0 : index
      %c0_18 = arith.constant 0 : index
      %39 = vector.load %arg2[%c0_17, %c0_18] : memref<288x32xbf16, #tpu.memory_space<vmem>>, vector<288x32xbf16>
      %cst = arith.constant dense<0.000000e+00> : vector<14x32xf32>
      %40 = tpu.matmul %38, %39, %cst {dimension_numbers = #tpu.dot_dimension_numbers<[1], [0], [0], [1], [0, 0, 1, 1], [], []>} : vector<14x288xbf16>, vector<288x32xbf16>, vector<14x32xf32> -> vector<14x32xf32>
      %c2_i32_19 = arith.constant 2 : i32
      %41 = arith.muli %c2_i32_19, %arg5 : i32
      %c1_i32_20 = arith.constant 1 : i32
      %42 = arith.addi %41, %c1_i32_20 : i32
      %c0_i32_21 = arith.constant 0 : i32
      %43 = arith.addi %42, %c0_i32_21 : i32
      %c0_22 = arith.constant 0 : index
      %44 = arith.index_cast %43 : i32 to index
      %c0_23 = arith.constant 0 : index
      %c0_24 = arith.constant 0 : index
      %45 = vector.load %arg1[%c0_22, %44, %c0_23, %c0_24] : memref<1x16x16x32xbf16, #tpu.memory_space<vmem>>, vector<1x1x16x32xbf16>
      %46 = vector.shape_cast %45 : vector<1x1x16x32xbf16> to vector<16x32xbf16>
      %47 = vector.extract_strided_slice %46 {offsets = [0, 0], sizes = [14, 32], strides = [1, 1]} : vector<16x32xbf16> to vector<14x32xbf16>
      %48 = vector.extract_strided_slice %46 {offsets = [1, 0], sizes = [14, 32], strides = [1, 1]} : vector<16x32xbf16> to vector<14x32xbf16>
      %49 = vector.extract_strided_slice %46 {offsets = [2, 0], sizes = [14, 32], strides = [1, 1]} : vector<16x32xbf16> to vector<14x32xbf16>
      %c1_i32_25 = arith.constant 1 : i32
      %50 = arith.addi %42, %c1_i32_25 : i32
      %c0_26 = arith.constant 0 : index
      %51 = arith.index_cast %50 : i32 to index
      %c0_27 = arith.constant 0 : index
      %c0_28 = arith.constant 0 : index
      %52 = vector.load %arg1[%c0_26, %51, %c0_27, %c0_28] : memref<1x16x16x32xbf16, #tpu.memory_space<vmem>>, vector<1x1x16x32xbf16>
      %53 = vector.shape_cast %52 : vector<1x1x16x32xbf16> to vector<16x32xbf16>
      %54 = vector.extract_strided_slice %53 {offsets = [0, 0], sizes = [14, 32], strides = [1, 1]} : vector<16x32xbf16> to vector<14x32xbf16>
      %55 = vector.extract_strided_slice %53 {offsets = [1, 0], sizes = [14, 32], strides = [1, 1]} : vector<16x32xbf16> to vector<14x32xbf16>
      %56 = vector.extract_strided_slice %53 {offsets = [2, 0], sizes = [14, 32], strides = [1, 1]} : vector<16x32xbf16> to vector<14x32xbf16>
      %c2_i32_29 = arith.constant 2 : i32
      %57 = arith.addi %42, %c2_i32_29 : i32
      %c0_30 = arith.constant 0 : index
      %58 = arith.index_cast %57 : i32 to index
      %c0_31 = arith.constant 0 : index
      %c0_32 = arith.constant 0 : index
      %59 = vector.load %arg1[%c0_30, %58, %c0_31, %c0_32] : memref<1x16x16x32xbf16, #tpu.memory_space<vmem>>, vector<1x1x16x32xbf16>
      %60 = vector.shape_cast %59 : vector<1x1x16x32xbf16> to vector<16x32xbf16>
      %61 = vector.extract_strided_slice %60 {offsets = [0, 0], sizes = [14, 32], strides = [1, 1]} : vector<16x32xbf16> to vector<14x32xbf16>
      %62 = vector.extract_strided_slice %60 {offsets = [1, 0], sizes = [14, 32], strides = [1, 1]} : vector<16x32xbf16> to vector<14x32xbf16>
      %63 = vector.extract_strided_slice %60 {offsets = [2, 0], sizes = [14, 32], strides = [1, 1]} : vector<16x32xbf16> to vector<14x32xbf16>
      %64 = tpu.concatenate %47, %48, %49, %54, %55, %56, %61, %62, %63 in 1 : vector<14x32xbf16>, vector<14x32xbf16>, vector<14x32xbf16>, vector<14x32xbf16>, vector<14x32xbf16>, vector<14x32xbf16>, vector<14x32xbf16>, vector<14x32xbf16>, vector<14x32xbf16> -> vector<14x288xbf16>
      %c0_33 = arith.constant 0 : index
      %c0_34 = arith.constant 0 : index
      %65 = vector.load %arg2[%c0_33, %c0_34] : memref<288x32xbf16, #tpu.memory_space<vmem>>, vector<288x32xbf16>
      %cst_35 = arith.constant dense<0.000000e+00> : vector<14x32xf32>
      %66 = tpu.matmul %64, %65, %cst_35 {dimension_numbers = #tpu.dot_dimension_numbers<[1], [0], [0], [1], [0, 0, 1, 1], [], []>} : vector<14x288xbf16>, vector<288x32xbf16>, vector<14x32xf32> -> vector<14x32xf32>
      %67 = arith.maximumf %40, %66 : vector<14x32xf32>
      %cst_36 = arith.constant dense<0.000000e+00> : vector<7x32xf32>
      %68 = tpu.matmul %7, %67, %cst_36 {dimension_numbers = #tpu.dot_dimension_numbers<[1], [0], [0], [1], [0, 0, 1, 1], [], []>} : vector<7x14xf32>, vector<14x32xf32>, vector<7x32xf32> -> vector<7x32xf32>
      %cst_37 = arith.constant dense<0.000000e+00> : vector<7x32xf32>
      %69 = tpu.matmul %14, %67, %cst_37 {dimension_numbers = #tpu.dot_dimension_numbers<[1], [0], [0], [1], [0, 0, 1, 1], [], []>} : vector<7x14xf32>, vector<14x32xf32>, vector<7x32xf32> -> vector<7x32xf32>
      %70 = arith.maximumf %68, %69 : vector<7x32xf32>
      %71 = vector.broadcast %0 : vector<1x32xf32> to vector<7x32xf32>
      %72 = arith.addf %70, %71 : vector<7x32xf32>
      %cst_38 = arith.constant 0.000000e+00 : f32
      %73 = vector.broadcast %cst_38 : f32 to vector<7x32xf32>
      %74 = arith.maximumf %72, %73 : vector<7x32xf32>
      %75 = arith.truncf %74 : vector<7x32xf32> to vector<7x32xbf16>
      %c0_39 = arith.constant 0 : index
      %76 = arith.index_cast %arg5 : i32 to index
      %c0_40 = arith.constant 0 : index
      %c0_41 = arith.constant 0 : index
      %77 = vector.load %arg4[%c0_39, %76, %c0_40, %c0_41] : memref<1x7x7x32xbf16, #tpu.memory_space<vmem>>, vector<1x1x7x32xbf16>
      %78 = vector.shape_cast %77 : vector<1x1x7x32xbf16> to vector<7x32xbf16>
      %79 = vector.shape_cast %75 : vector<7x32xbf16> to vector<1x1x7x32xbf16>
      tpu.vector_store %arg4[%c0_39, %76, %c0_40, %c0_41], %79 {strides = array<i32>} : memref<1x7x7x32xbf16, #tpu.memory_space<vmem>>, vector<1x1x7x32xbf16>,
    }
    %c7_i32_3 = arith.constant 7 : i32
    return
  }
  func.func @transform_0(%arg0: i32) -> (i32, i32, i32, i32) {
    %c0_i32 = arith.constant 0 : i32
    %c0_i32_0 = arith.constant 0 : i32
    %c0_i32_1 = arith.constant 0 : i32
    %c0_i32_2 = arith.constant 0 : i32
    return %arg0, %c0_i32, %c0_i32_0, %c0_i32_1 : i32, i32, i32, i32
  }
  func.func @transform_1(%arg0: i32) -> (i32, i32) {
    %c0_i32 = arith.constant 0 : i32
    %c0_i32_0 = arith.constant 0 : i32
    %c0_i32_1 = arith.constant 0 : i32
    return %c0_i32, %c0_i32_0 : i32, i32
  }
  func.func @transform_2(%arg0: i32) -> (i32, i32) {
    %c0_i32 = arith.constant 0 : i32
    %c0_i32_0 = arith.constant 0 : i32
    %c0_i32_1 = arith.constant 0 : i32
    return %c0_i32, %c0_i32_0 : i32, i32
  }
  func.func @transform_3(%arg0: i32) -> (i32, i32, i32, i32) {
    %c0_i32 = arith.constant 0 : i32
    %c0_i32_0 = arith.constant 0 : i32
    %c0_i32_1 = arith.constant 0 : i32
    %c0_i32_2 = arith.constant 0 : i32
    return %arg0, %c0_i32, %c0_i32_0, %c0_i32_1 : i32, i32, i32, i32
  }
}

module attributes {stable_mosaic.version = 11 : i64} {
  func.func @kernel(%arg0: i32, %arg1: memref<1x9x9x32xbf16, #tpu.memory_space<vmem>>, %arg2: memref<288x32xbf16, #tpu.memory_space<vmem>>, %arg3: memref<1x32xf32, #tpu.memory_space<vmem>>, %arg4: memref<1x7x7x32xbf16, #tpu.memory_space<vmem>>) attributes {dimension_semantics = [#tpu.dimension_semantics<parallel>], iteration_bounds = array<i64: 2>, scalar_prefetch = 0 : i64, scratch_operands = 0 : i64, tpu.core_type = #tpu.core_type<tc>, window_params = [{transform_indices = @transform_0, window_bounds = array<i64: 1, 9, 9, 32>}, {pipeline_mode = #tpu.pipeline_mode<synchronous>, transform_indices = @transform_1, window_bounds = array<i64: 288, 32>}, {pipeline_mode = #tpu.pipeline_mode<synchronous>, transform_indices = @transform_2, window_bounds = array<i64: 1, 32>}, {transform_indices = @transform_3, window_bounds = array<i64: 1, 7, 7, 32>}]} {
    %c0 = arith.constant 0 : index
    %c0_0 = arith.constant 0 : index
    %0 = vector.load %arg3[%c0, %c0_0] : memref<1x32xf32, #tpu.memory_space<vmem>>, vector<1x32xf32>
    %c0_i32 = arith.constant 0 : i32
    %c7_i32 = arith.constant 7 : i32
    %1 = arith.addi %c0_i32, %c7_i32 : i32
    %c1_i32 = arith.constant 1 : i32
    scf.for %arg5 = %c0_i32 to %1 step %c1_i32  : i32 {
      %c0_i32_2 = arith.constant 0 : i32
      %2 = arith.addi %arg5, %c0_i32_2 : i32
      %c0_3 = arith.constant 0 : index
      %3 = arith.index_cast %2 : i32 to index
      %c0_4 = arith.constant 0 : index
      %c0_5 = arith.constant 0 : index
      %4 = vector.load %arg1[%c0_3, %3, %c0_4, %c0_5] : memref<1x9x9x32xbf16, #tpu.memory_space<vmem>>, vector<1x1x9x32xbf16>
      %5 = vector.shape_cast %4 : vector<1x1x9x32xbf16> to vector<9x32xbf16>
      %6 = vector.extract_strided_slice %5 {offsets = [0, 0], sizes = [7, 32], strides = [1, 1]} : vector<9x32xbf16> to vector<7x32xbf16>
      %7 = vector.extract_strided_slice %5 {offsets = [1, 0], sizes = [7, 32], strides = [1, 1]} : vector<9x32xbf16> to vector<7x32xbf16>
      %8 = vector.extract_strided_slice %5 {offsets = [2, 0], sizes = [7, 32], strides = [1, 1]} : vector<9x32xbf16> to vector<7x32xbf16>
      %c1_i32_6 = arith.constant 1 : i32
      %9 = arith.addi %arg5, %c1_i32_6 : i32
      %c0_7 = arith.constant 0 : index
      %10 = arith.index_cast %9 : i32 to index
      %c0_8 = arith.constant 0 : index
      %c0_9 = arith.constant 0 : index
      %11 = vector.load %arg1[%c0_7, %10, %c0_8, %c0_9] : memref<1x9x9x32xbf16, #tpu.memory_space<vmem>>, vector<1x1x9x32xbf16>
      %12 = vector.shape_cast %11 : vector<1x1x9x32xbf16> to vector<9x32xbf16>
      %13 = vector.extract_strided_slice %12 {offsets = [0, 0], sizes = [7, 32], strides = [1, 1]} : vector<9x32xbf16> to vector<7x32xbf16>
      %14 = vector.extract_strided_slice %12 {offsets = [1, 0], sizes = [7, 32], strides = [1, 1]} : vector<9x32xbf16> to vector<7x32xbf16>
      %15 = vector.extract_strided_slice %12 {offsets = [2, 0], sizes = [7, 32], strides = [1, 1]} : vector<9x32xbf16> to vector<7x32xbf16>
      %c2_i32 = arith.constant 2 : i32
      %16 = arith.addi %arg5, %c2_i32 : i32
      %c0_10 = arith.constant 0 : index
      %17 = arith.index_cast %16 : i32 to index
      %c0_11 = arith.constant 0 : index
      %c0_12 = arith.constant 0 : index
      %18 = vector.load %arg1[%c0_10, %17, %c0_11, %c0_12] : memref<1x9x9x32xbf16, #tpu.memory_space<vmem>>, vector<1x1x9x32xbf16>
      %19 = vector.shape_cast %18 : vector<1x1x9x32xbf16> to vector<9x32xbf16>
      %20 = vector.extract_strided_slice %19 {offsets = [0, 0], sizes = [7, 32], strides = [1, 1]} : vector<9x32xbf16> to vector<7x32xbf16>
      %21 = vector.extract_strided_slice %19 {offsets = [1, 0], sizes = [7, 32], strides = [1, 1]} : vector<9x32xbf16> to vector<7x32xbf16>
      %22 = vector.extract_strided_slice %19 {offsets = [2, 0], sizes = [7, 32], strides = [1, 1]} : vector<9x32xbf16> to vector<7x32xbf16>
      %23 = tpu.concatenate %6, %7, %8, %13, %14, %15, %20, %21, %22 in 1 : vector<7x32xbf16>, vector<7x32xbf16>, vector<7x32xbf16>, vector<7x32xbf16>, vector<7x32xbf16>, vector<7x32xbf16>, vector<7x32xbf16>, vector<7x32xbf16>, vector<7x32xbf16> -> vector<7x288xbf16>
      %c0_13 = arith.constant 0 : index
      %c0_14 = arith.constant 0 : index
      %24 = vector.load %arg2[%c0_13, %c0_14] : memref<288x32xbf16, #tpu.memory_space<vmem>>, vector<288x32xbf16>
      %cst = arith.constant dense<0.000000e+00> : vector<7x32xf32>
      %25 = tpu.matmul %23, %24, %cst {dimension_numbers = #tpu.dot_dimension_numbers<[1], [0], [0], [1], [0, 0, 1, 1], [], []>} : vector<7x288xbf16>, vector<288x32xbf16>, vector<7x32xf32> -> vector<7x32xf32>
      %26 = vector.broadcast %0 : vector<1x32xf32> to vector<7x32xf32>
      %27 = arith.addf %25, %26 : vector<7x32xf32>
      %cst_15 = arith.constant 0.000000e+00 : f32
      %28 = vector.broadcast %cst_15 : f32 to vector<7x32xf32>
      %29 = arith.maximumf %27, %28 : vector<7x32xf32>
      %30 = arith.truncf %29 : vector<7x32xf32> to vector<7x32xbf16>
      %c0_16 = arith.constant 0 : index
      %31 = arith.index_cast %arg5 : i32 to index
      %c0_17 = arith.constant 0 : index
      %c0_18 = arith.constant 0 : index
      %32 = vector.load %arg4[%c0_16, %31, %c0_17, %c0_18] : memref<1x7x7x32xbf16, #tpu.memory_space<vmem>>, vector<1x1x7x32xbf16>
      %33 = vector.shape_cast %32 : vector<1x1x7x32xbf16> to vector<7x32xbf16>
      %34 = vector.shape_cast %30 : vector<7x32xbf16> to vector<1x1x7x32xbf16>
      tpu.vector_store %arg4[%c0_16, %31, %c0_17, %c0_18], %34 {strides = array<i32>} : memref<1x7x7x32xbf16, #tpu.memory_space<vmem>>, vector<1x1x7x32xbf16>,
    }
    %c7_i32_1 = arith.constant 7 : i32
    return
  }
  func.func @transform_0(%arg0: i32) -> (i32, i32, i32, i32) {
    %c0_i32 = arith.constant 0 : i32
    %c0_i32_0 = arith.constant 0 : i32
    %c0_i32_1 = arith.constant 0 : i32
    %c0_i32_2 = arith.constant 0 : i32
    return %arg0, %c0_i32, %c0_i32_0, %c0_i32_1 : i32, i32, i32, i32
  }
  func.func @transform_1(%arg0: i32) -> (i32, i32) {
    %c0_i32 = arith.constant 0 : i32
    %c0_i32_0 = arith.constant 0 : i32
    %c0_i32_1 = arith.constant 0 : i32
    return %c0_i32, %c0_i32_0 : i32, i32
  }
  func.func @transform_2(%arg0: i32) -> (i32, i32) {
    %c0_i32 = arith.constant 0 : i32
    %c0_i32_0 = arith.constant 0 : i32
    %c0_i32_1 = arith.constant 0 : i32
    return %c0_i32, %c0_i32_0 : i32, i32
  }
  func.func @transform_3(%arg0: i32) -> (i32, i32, i32, i32) {
    %c0_i32 = arith.constant 0 : i32
    %c0_i32_0 = arith.constant 0 : i32
    %c0_i32_1 = arith.constant 0 : i32
    %c0_i32_2 = arith.constant 0 : i32
    return %arg0, %c0_i32, %c0_i32_0, %c0_i32_1 : i32, i32, i32, i32
  }
}

module attributes {stable_mosaic.version = 11 : i64} {
  func.func @_fc_head_kernel(%arg0: i32, %arg1: memref<2x1568xbf16, #tpu.memory_space<vmem>>, %arg2: memref<1568x20xbf16, #tpu.memory_space<vmem>>, %arg3: memref<1x20xf32, #tpu.memory_space<vmem>>, %arg4: memref<20x10xf32, #tpu.memory_space<vmem>>, %arg5: memref<2x10xf32, #tpu.memory_space<vmem>>) attributes {dimension_semantics = [#tpu.dimension_semantics<parallel>], iteration_bounds = array<i64: 1>, scalar_prefetch = 0 : i64, scratch_operands = 0 : i64, tpu.core_type = #tpu.core_type<tc>, window_params = [{transform_indices = @transform_0, window_bounds = array<i64: 2, 1568>}, {pipeline_mode = #tpu.pipeline_mode<synchronous>, transform_indices = @transform_1, window_bounds = array<i64: 1568, 20>}, {pipeline_mode = #tpu.pipeline_mode<synchronous>, transform_indices = @transform_2, window_bounds = array<i64: 1, 20>}, {pipeline_mode = #tpu.pipeline_mode<synchronous>, transform_indices = @transform_3, window_bounds = array<i64: 20, 10>}, {transform_indices = @transform_4, window_bounds = array<i64: 2, 10>}]} {
    %c0 = arith.constant 0 : index
    %c0_0 = arith.constant 0 : index
    %0 = vector.load %arg1[%c0, %c0_0] : memref<2x1568xbf16, #tpu.memory_space<vmem>>, vector<2x1568xbf16>
    %c0_1 = arith.constant 0 : index
    %c0_2 = arith.constant 0 : index
    %1 = vector.load %arg2[%c0_1, %c0_2] : memref<1568x20xbf16, #tpu.memory_space<vmem>>, vector<1568x20xbf16>
    %cst = arith.constant dense<0.000000e+00> : vector<2x20xf32>
    %2 = tpu.matmul %0, %1, %cst {dimension_numbers = #tpu.dot_dimension_numbers<[1], [0], [0], [1], [0, 0, 1, 1], [], []>} : vector<2x1568xbf16>, vector<1568x20xbf16>, vector<2x20xf32> -> vector<2x20xf32>
    %c0_3 = arith.constant 0 : index
    %c0_4 = arith.constant 0 : index
    %3 = vector.load %arg3[%c0_3, %c0_4] : memref<1x20xf32, #tpu.memory_space<vmem>>, vector<1x20xf32>
    %4 = vector.broadcast %3 : vector<1x20xf32> to vector<2x20xf32>
    %5 = arith.addf %2, %4 : vector<2x20xf32>
    %cst_5 = arith.constant 0.000000e+00 : f32
    %6 = vector.broadcast %cst_5 : f32 to vector<2x20xf32>
    %7 = arith.maximumf %5, %6 : vector<2x20xf32>
    %c0_6 = arith.constant 0 : index
    %c0_7 = arith.constant 0 : index
    %8 = vector.load %arg4[%c0_6, %c0_7] : memref<20x10xf32, #tpu.memory_space<vmem>>, vector<20x10xf32>
    %cst_8 = arith.constant dense<0.000000e+00> : vector<2x10xf32>
    %9 = tpu.matmul %7, %8, %cst_8 {dimension_numbers = #tpu.dot_dimension_numbers<[1], [0], [0], [1], [0, 0, 1, 1], [], []>} : vector<2x20xf32>, vector<20x10xf32>, vector<2x10xf32> -> vector<2x10xf32>
    %cst_9 = arith.constant dense<0xFF800000> : vector<2xf32>
    %10 = vector.multi_reduction <maximumf>, %9, %cst_9 [1] : vector<2x10xf32> to vector<2xf32>
    %11 = vector.shape_cast %10 : vector<2xf32> to vector<2x1xf32>
    %12 = vector.broadcast %11 : vector<2x1xf32> to vector<2x10xf32>
    %13 = arith.subf %9, %12 : vector<2x10xf32>
    %14 = math.exp %13 : vector<2x10xf32>
    %cst_10 = arith.constant dense<0.000000e+00> : vector<2xf32>
    %15 = vector.multi_reduction <add>, %14, %cst_10 [1] : vector<2x10xf32> to vector<2xf32>
    %16 = vector.shape_cast %15 : vector<2xf32> to vector<2x1xf32>
    %17 = math.log %16 : vector<2x1xf32>
    %18 = vector.broadcast %17 : vector<2x1xf32> to vector<2x10xf32>
    %19 = arith.subf %13, %18 : vector<2x10xf32>
    %c0_11 = arith.constant 0 : index
    %c0_12 = arith.constant 0 : index
    %20 = vector.load %arg5[%c0_11, %c0_12] : memref<2x10xf32, #tpu.memory_space<vmem>>, vector<2x10xf32>
    tpu.vector_store %arg5[%c0_11, %c0_12], %19 {strides = array<i32>} : memref<2x10xf32, #tpu.memory_space<vmem>>, vector<2x10xf32>,
    return
  }
  func.func @transform_0(%arg0: i32) -> (i32, i32) {
    %c0_i32 = arith.constant 0 : i32
    %c0_i32_0 = arith.constant 0 : i32
    return %arg0, %c0_i32 : i32, i32
  }
  func.func @transform_1(%arg0: i32) -> (i32, i32) {
    %c0_i32 = arith.constant 0 : i32
    %c0_i32_0 = arith.constant 0 : i32
    %c0_i32_1 = arith.constant 0 : i32
    return %c0_i32, %c0_i32_0 : i32, i32
  }
  func.func @transform_2(%arg0: i32) -> (i32, i32) {
    %c0_i32 = arith.constant 0 : i32
    %c0_i32_0 = arith.constant 0 : i32
    %c0_i32_1 = arith.constant 0 : i32
    return %c0_i32, %c0_i32_0 : i32, i32
  }
  func.func @transform_3(%arg0: i32) -> (i32, i32) {
    %c0_i32 = arith.constant 0 : i32
    %c0_i32_0 = arith.constant 0 : i32
    %c0_i32_1 = arith.constant 0 : i32
    return %c0_i32, %c0_i32_0 : i32, i32
  }
  func.func @transform_4(%arg0: i32) -> (i32, i32) {
    %c0_i32 = arith.constant 0 : i32
    %c0_i32_0 = arith.constant 0 : i32
    return %arg0, %c0_i32 : i32, i32
  }
}

</mosaic_0001>

<bundles_post_ra>
// kernel: forward.6
= control target key start
LH: loop header
LB: loop body
LE: loop exit
PB: predicated region body
PF: predicated region fallthrough
CT: control target
= control target key end

     0   :  { %s752_s12 = smov 0   ;;  %s864_s0 = inlined_call_operand.vmem [shape: bf16[2,16,16,32], index: 0, kind: input, shape index: {}]   ;;  %s865_s1 = inlined_call_operand.vmem [shape: bf16[288,32], index: 1, kind: input, shape index: {}]   ;;  %s866_s2 = inlined_call_operand.vmem [shape: f32[1,32], index: 2, kind: input, shape index: {}]   ;;  %s867_s3 = inlined_call_operand.vmem [shape: bf16[2,14,14,32], index: 3, kind: output, shape index: {}]  }
   0x1 LB: > { %s586_s13 = sadd.s32 4294967295, %s721_s12   ;;  %p590_p0 = scmp.ge.s32.totalorder %s721_s12, 1  ;;  %s721_s12 = sphi %s752_s12, %s13_s12  }
   0x2   : > { %p137_p1 = scmp.lt.s32.totalorder %s721_s12, 3 }
   0x4   : > { %p138_p2 = pnand %p590_p0, %p137_p1 }
   0x5   : > { %p161_p3 = scmp.lt.s32.totalorder (!%p138_p2), %s586_s13, 1  ;;  %v763_v0 = vld [vmem:[%s866_s2] ss:$0 sm:$0xff] (!%p138_p2)  ;;  %s775_s24 = smov (!%p138_p2), 0  }
   0x6   : > { %141 = sbr.rel (%p138_p2) target bundleno = 374 (0x176), region = 32 }
   0xd   : > { %s869_s13 = smov (!%p161_p3, %s586_s13), 1 }
   0xe   : > { %s630_s16 = sshll.u32 %s869_s13, 7  ;;  %s668_s17 = smul.u32 112, %s869_s13 }
   0xf   : > { %s768_s20 = scalar_lea.vmem %s864_s0, %s630_s16 }
  0x10   : > { %s773_s23 = scalar_lea.vmem %s867_s3, %s668_s17 }
  0x11 LB: >> { %v693_v1 = vld [vmem:[%s865_s1 + $0x40] sm:$0xff]   ;;  %s631_s29 = sshll.u32 %s725_s24, 3  ;;  %v695_v3 = vld [vmem:[%s865_s1 + $0x48] sm:$0xff]   ;;  %v727_v6 = vmov 0.0   ;;  %s728_s6 = smov 64   ;;  %v697_v11 = vld [vmem:[%s865_s1 + $0x50] sm:$0xff]   ;;  %s725_s24 = sphi %s775_s24, %s178_s24  }
  0x12   : >> { %v694_v2 = vld [vmem:[%s865_s1] sm:$0xff]   ;;  %635 = vmatprep.subr.bf16.mxu0 %v693_v1  ;;  %s181_s30 = scalar_lea.vmem %s768_s20, %s631_s29  ;;  %660 = vmatprep.subr.bf16.mxu1 %v727_v6  ;;  %v696_v10 = vld [vmem:[%s865_s1 + $0x8] sm:$0xff]   ;;  %s729_s11 = smov 32   ;;  %v698_v17 = vld [vmem:[%s865_s1 + $0x10] sm:$0xff]   ;;  %vm731_vm0 = vmmov 0   ;;  %vm247_vm1 = vcmask 261120  }
  0x13   : >> { %636 = vmatpush3.bf16.msra.mxu0 %v694_v2  ;;  %v690_v4 = vld [vmem:[%s181_s30 + $0x10] sm:$0xff]   ;;  %v793_v5 = vld [vmem:[%s181_s30 + $0x8] sm:$0xff]   ;;  %v795_v7 = vld [vmem:[%s181_s30] sm:$0xff]   ;;  %s730_s19 = smov 96   ;;  %664 = vmatprep.mubr.msk.bf16.mxu1 %vm731_vm0, %v727_v6  ;;  %vm250_vm2 = vcmask 523264   ;;  %vm253_vm3 = vcmask 785408   ;;  %s511_s18 = scalar_lea.vmem %s773_s23, %s631_s29 }
  0x14   : >> { %637 = vmatprep.subr.bf16.mxu0 %v695_v3  ;;  %235 = vrot.lane.b32.xlu1 %v690_v4, %s728_s6  ;;  %v227_v8 = vrot.slane %v793_v5, 1  ;;  %v240_v9 = vshll.u32 %v690_v4, 16  ;;  %v210_v12 = vrot.slane %v795_v7, 1  ;;  %v202_v13 = vshrl.u32 %v795_v7, 16  ;;  %v699_v19 = vld [vmem:[%s865_s1 + $0x58] sm:$0xff]   ;;  %v701_v23 = vld [vmem:[%s865_s1 + $0x60] sm:$0xff]  }
  0x15   : >> { %v204_v14 = vshll.u32 %v795_v7, 16  ;;  %v238_v15 = vshrl.u32 %v690_v4, 16  ;;  %v700_v21 = vld [vmem:[%s865_s1 + $0x18] sm:$0xff]   ;;  %v702_v24 = vld [vmem:[%s865_s1 + $0x20] sm:$0xff]   ;;  %v703_v25 = vld [vmem:[%s865_s1 + $0x68] sm:$0xff]   ;;  %v246_v30 = vrot.slane %v690_v4, 1 }
  0x16   : >> { %228 = vrot.lane.b32.xlu0 %v227_v8, %s729_s11  ;;  %v242_v16 = vrot.slane %v240_v9, 1  ;;  %v707_v26 = vld [vmem:[%s865_s1 + $0x80] sm:$0xff]   ;;  %v704_v27 = vld [vmem:[%s865_s1 + $0x28] sm:$0xff]   ;;  %v705_v29 = vld [vmem:[%s865_s1 + $0x70] sm:$0xff]   ;;  %v223_v34 = vshll.u32 %v793_v5, 16  ;;  %v221_v36 = vshrl.u32 %v793_v5, 16 }
  0x17   : >> { %638 = vmatpush3.bf16.msra.mxu0 %v696_v10  ;;  %v206_v18 = vrot.slane %v204_v14, 1  ;;  %661 = vmatpush3.bf16.msra.mxu1 %v707_v26  ;;  %v710_v28 = vld [vmem:[%s865_s1 + $0x88] sm:$0xff]   ;;  %v706_v31 = vld [vmem:[%s865_s1 + $0x30] sm:$0xff]   ;;  %v708_v32 = vld [vmem:[%s865_s1 + $0x78] sm:$0xff]   ;;  %vm512_vm4 = vcmask 257024   ;;  %vm514_vm5 = vcmask 256000  }
  0x18   : >> { %211 = vrot.lane.b32.xlu1 %v210_v12, %s728_s6  ;;  %639 = vmatprep.subr.bf16.mxu0 %v697_v11  ;;  %v243_v22 = vor.u32 %v242_v16, %v238_v15  ;;  %v709_v33 = vld [vmem:[%s865_s1 + $0x38] sm:$0xff]   ;;  %v225_v37 = vrot.slane %v223_v34, 1  ;;  %s178_s24 = sadd.s32 1, %s725_s24  }
  0x19   : >> { %v207_v20 = vor.u32 %v206_v18, %v202_v13  ;;  %662 = vmatprep.subr.bf16.mxu1 %v727_v6  ;;  %p175_p4 = scmp.ge.s32.totalorder %s178_s24, 14  }
  0x1a   : >> { %v226_v39 = vor.u32 %v225_v37, %v221_v36 }
  0x1b   : >> { %640 = vmatpush3.bf16.msra.mxu0 %v698_v17  ;;  %208 = vrot.lane.b32.xlu0 %v207_v20, %s729_s11 }
  0x1c   : >> { %218 = vrot.lane.b32.xlu1 %v793_v5, %s730_s19  ;;  %641 = vmatprep.subr.bf16.mxu0 %v699_v19 }
  0x1d   : >> { %663 = vmatpush3.bf16.msra.mxu1 %v710_v28 }
  0x1f   : >> { %642 = vmatpush3.bf16.msra.mxu0 %v700_v21  ;;  %244 = vrot.lane.b32.xlu0 %v243_v22, %s730_s19 }
  0x20   : >> { %643 = vmatprep.subr.bf16.mxu0 %v701_v23  ;;  %665 = vmatmul.mubr.msk.bf16.vlgmr.msra.gmra.mrb[0].mxu1 %vm247_vm1, %v246_v30 }
  0x23   : >> { %644 = vmatpush3.bf16.msra.mxu0 %v702_v24 }
  0x24   : >> { %645 = vmatprep.subr.bf16.mxu0 %v703_v25 }
  0x27   : >> { %646 = vmatpush3.bf16.msra.mxu0 %v704_v27 }
  0x28   : >> { %647 = vmatprep.subr.bf16.mxu0 %v705_v29 }
  0x2b   : >> { %648 = vmatpush3.bf16.msra.mxu0 %v706_v31 }
  0x2c   : >> { %649 = vmatprep.subr.bf16.mxu0 %v708_v32 }
  0x2f   : >> { %650 = vmatpush3.bf16.msra.mxu0 %v709_v33 }
  0x86   : >> { %v236_v35 = vpop.permute.xlu1 %235 }
  0x88   : >> { %v229_v38 = vpop.permute.xlu0 %228 }
  0x89   : >> { %v259_v42 = vsel %vm247_vm1, %v226_v39, %v229_v38 }
  0x8a   : >> { %v212_v40 = vpop.permute.xlu1 %211  ;;  %v261_v47 = vsel %vm250_vm2, %v259_v42, %v236_v35 }
  0x8d   : >> { %v209_v41 = vpop.permute.xlu0 %208 }
  0x8e   : >> { %v249_v43 = vsel %vm247_vm1, %v795_v7, %v209_v41  ;;  %v219_v44 = vpop.permute.xlu1 %218 }
  0x8f   : >> { %v252_v45 = vsel %vm250_vm2, %v249_v43, %v212_v40 }
  0x90   : >> { %v255_v49 = vsel %vm253_vm3, %v252_v45, %v219_v44 }
  0x91   : >> { %v245_v46 = vpop.permute.xlu0 %244 }
  0x92   : >> { %v263_v48 = vsel %vm253_vm3, %v261_v47, %v245_v46 }
  0x93   : >> { %450 = vmatprep.mubr.bf16.mxu0 %v263_v48 }
  0x94   : >> { %451 = vmatmul.mubr.bf16.vlgmr.msra.gmra.mrb[0].mxu0 %v255_v49 }
  0xf3   : >> { %v493_v50 = vpop.f32.mrb[0].mxu1 }
  0xf4   : >> { %v666_v51 = vpop.f32.mrb[1].mxu1 }
  0xf5   : >> { %v496_v52 = vpop.f32.mrb[2].mxu1 }
  0xf6   : >> { %v667_v53 = vpop.f32.mrb[3].mxu1 }
 0x167   : >> { %v651_v54 = vpop.f32.mrb[0].mxu0 }
 0x168   : >> { %v652_v55 = vpop.f32.mrb[1].mxu0 }
 0x169   : >> { %v653_v56 = vadd.f32 %v652_v55, %v651_v54  ;;  %v654_v57 = vpop.f32.mrb[2].mxu0 }
 0x16a   : >> { %v655_v58 = vpop.f32.mrb[3].mxu0 }
 0x16b   : >> { %v453_v59 = vadd.f32 %v653_v56, %v763_v0  ;;  %v656_v60 = vadd.f32 %v655_v58, %v654_v57 }
 0x16d   : >> { %v494_v61 = vadd.f32 %v493_v50, %v453_v59  ;;  %v456_v62 = vadd.f32 %v656_v60, %v763_v0 }
 0x16f   : >> { %v500_v63 = vmax.f32 %v494_v61, 0.0  ;;  %v497_v1 = vadd.f32 %v496_v52, %v456_v62  ;;  %177 = sbr.rel (!%p175_p4) target bundleno = 17 (0x11), region = 73 }
 0x171   : >> { %v632_v2 = vpack.c.bf16 %v500_v63, %v500_v63  ;;  %v501_v3 = vmax.f32 %v497_v1, 0.0 }
 0x173   : >> { %513 = vst.msk [vmem:[%s511_s18] sm:$0xf] %vm512_vm4, %v632_v2  ;;  %v633_v4 = vpack.c.bf16 %v501_v3, %v501_v3 }
 0x175   : >> { %515 = vst.msk [vmem:[%s511_s18 + $0x4] sm:$0x7] %vm514_vm5, %v633_v4 }
 0x176 PF: > { %s13_s12 = sadd.s32 1, %s721_s12  }
 0x177   : > { %p10_p5 = scmp.ge.s32.totalorder %s13_s12, 4  }
 0x179   :  { %12 = sbr.rel (!%p10_p5) target bundleno = 1 (0x1), region = 84 }

// kernel: forward.5
= control target key start
LH: loop header
LB: loop body
LE: loop exit
PB: predicated region body
PF: predicated region fallthrough
CT: control target
= control target key end

     0   :  { %s1126_s12 = smov 0   ;;  %s1531_s0 = inlined_call_operand.vmem [shape: f32[2,30,30,1], index: 0, kind: input, shape index: {}]   ;;  %s1532_s1 = inlined_call_operand.vmem [shape: f32[9,32], index: 1, kind: input, shape index: {}]   ;;  %s1533_s2 = inlined_call_operand.vmem [shape: f32[1,32], index: 2, kind: input, shape index: {}]   ;;  %s1534_s3 = inlined_call_operand.vmem [shape: bf16[2,14,14,32], index: 3, kind: output, shape index: {}]  }
   0x1 LB: > { %s951_s13 = sadd.s32 4294967295, %s1097_s12   ;;  %p955_p0 = scmp.ge.s32.totalorder %s1097_s12, 1  ;;  %s1097_s12 = sphi %s1126_s12, %s13_s12  }
   0x2   : > { %p137_p1 = scmp.lt.s32.totalorder %s1097_s12, 3 }
   0x4   : > { %p138_p2 = pnand %p955_p0, %p137_p1 }
   0x5   : > { %p161_p3 = scmp.lt.s32.totalorder (!%p138_p2), %s951_s13, 1  ;;  %v1137_v0 = vld [vmem:[%s1533_s2] ss:$0 sm:$0xff] (!%p138_p2)  ;;  %v172_v1 = vlaneseq (!%p138_p2)  ;;  %v1103_v8 = vmov (!%p138_p2), 0.0   ;;  %s1157_s24 = smov (!%p138_p2), 0  }
   0x6   : > { %141 = sbr.rel (%p138_p2) target bundleno = 441 (0x1b9), region = 32 }
   0x7   : > { %v173_v2 = vshrl.u32 (!%p138_p2), %v172_v1, 7  ;;  %v176_v3 = vand.u32 (!%p138_p2), 127, %v172_v1 }
   0x9   : > { %v174_v4 = vadd.s32 (!%p138_p2), 8, %v173_v2  ;;  %v177_v5 = vmul.u32 (!%p138_p2), 2, %v173_v2 }
   0xb   : > { %v178_v6 = vmul.u32 (!%p138_p2), 2, %v174_v4  ;;  %vm179_vm0 = vcmp.eq.s32.totalorder (!%p138_p2), %v176_v3, %v177_v5  ;;  %v185_v7 = vadd.s32 (!%p138_p2), 1, %v177_v5 }
   0xc   : > { %v1149_v9 = vsel (!%p138_p2), %vm179_vm0, 1.0, %v1103_v8 }
   0xd   : > { %s1549_s13 = smov (!%p161_p3, %s951_s13), 1  ;;  %vm180_vm1 = vcmp.eq.s32.totalorder %v176_v3, %v178_v6  ;;  %v186_v10 = vadd.s32 1, %v178_v6  ;;  %vm187_vm2 = vcmp.eq.s32.totalorder %v176_v3, %v185_v7 }
   0xe   : > { %s1064_s16 = smul.u32 960, %s1549_s13  ;;  %v1151_v11 = vsel %vm180_vm1, 1.0, %v1103_v8  ;;  %v1153_v12 = vsel %vm187_vm2, 1.0, %v1103_v8 }
   0xf   : > { %s1065_s17 = smul.u32 112, %s1549_s13  ;;  %vm188_vm3 = vcmp.eq.s32.totalorder %v176_v3, %v186_v10 }
  0x10   : > { %s1142_s20 = scalar_lea.vmem %s1531_s0, %s1064_s16  ;;  %v1155_v13 = vsel %vm188_vm3, 1.0, %v1103_v8 }
  0x11   : > { %s1147_s23 = scalar_lea.vmem %s1534_s3, %s1065_s17 }
  0x12 LB: >> { %v1104_v14 = vmov 0   ;;  %s1003_s25 = sshll.u32 %s1101_s24, 6  ;;  %vm682_vm4 = vcmask 228352   ;;  %v1171_v31 = vld [vmem:[%s1532_s1 + $0x1] ss:$0 sm:$0xff]  ;;  %vm252_vm5 = vcmask 1046528   ;;  %s1101_s24 = sphi %s1157_s24, %s198_s24  }
  0x13   : >> { %1086 = vset.pattern.permute.xlu1 %v1104_v14  ;;  %1085 = vset.pattern.permute.xlu0 %v1104_v14  ;;  %s201_s26 = scalar_lea.vmem %s1142_s20, %s1003_s25  ;;  %v1176_v34 = vld [vmem:[%s1532_s1 + $0x2] ss:$0 sm:$0xff]  ;;  %v1184_v36 = vld [vmem:[%s1532_s1 + $0x4] ss:$0 sm:$0xff]  ;;  %v1189_v37 = vld [vmem:[%s1532_s1] ss:$0 sm:$0xff] }
  0x14   : >> { %v204_v15 = vld [vmem:[%s201_s26 + $0x10] sm:$0xff]  ;;  %v202_v16 = vld [vmem:[%s201_s26] sm:$0xff]  ;;  %v203_v18 = vld [vmem:[%s201_s26 + $0x8] sm:$0xff]  ;;  %1030 = vmatprep.mubr.msk.f32.mxu0 %vm682_vm4, %v1149_v9  ;;  %1041 = vmatprep.mubr.msk.f32.mxu1 %vm682_vm4, %v1153_v12  ;;  %vm281_vm6 = vcmask 1045504   ;;  %vm689_vm7 = vcmask 1043456   ;;  %vm1105_vm8 = vmmov 1  }
  0x15   : >> { %219 = vperm.xlu1 %1086, %v204_v15   ;;  %209 = vperm.xlu0 %1085, %v202_v16   ;;  %v969_v17 = vld [vmem:[%s201_s26 + $0x20] sm:$0xff]  ;;  %v971_v19 = vld [vmem:[%s201_s26 + $0x30] sm:$0xff]  ;;  %v970_v20 = vld [vmem:[%s201_s26 + $0x28] sm:$0xff]  ;;  %s1009_s19 = sshll.u32 %s1101_s24, 3  ;;  %vm873_vm10 = vcmask 256000   ;;  %vm871_vm11 = vcmask 257024  }
  0x16   : >> { %v972_v21 = vld [vmem:[%s201_s26 + $0x38] sm:$0x3f]  ;;  %v979_v23 = vld [vmem:[%s201_s26 + $0x48] sm:$0xff]  ;;  %v978_v24 = vld [vmem:[%s201_s26 + $0x40] sm:$0xff]  ;;  %s870_s21 = scalar_lea.vmem %s1147_s23, %s1009_s19  ;;  %s198_s24 = sadd.s32 1, %s1101_s24  }
  0x17   : >> { %v205_v22 = vld [vmem:[%s201_s26 + $0x18] sm:$0x3f]  ;;  %v980_v26 = vld [vmem:[%s201_s26 + $0x50] sm:$0xff]  ;;  %v988_v27 = vld [vmem:[%s201_s26 + $0x68] sm:$0xff]  ;;  %p195_p4 = scmp.ge.s32.totalorder %s198_s24, 14  }
  0x18   : >> { %v981_v25 = vld [vmem:[%s201_s26 + $0x58] sm:$0x3f]  ;;  %v987_v28 = vld [vmem:[%s201_s26 + $0x60] sm:$0xff]  ;;  %v989_v30 = vld [vmem:[%s201_s26 + $0x70] sm:$0xff] }
  0x19   : >> { %307 = vperm.xlu1 %1086, %v969_v17   ;;  %214 = vperm.xlu0 %1085, %v203_v18   ;;  %v990_v29 = vld [vmem:[%s201_s26 + $0x78] sm:$0x3f]  ;;  %v1198_v40 = vld [vmem:[%s1532_s1 + $0x5] ss:$0 sm:$0xff]  ;;  %v1207_v45 = vld [vmem:[%s1532_s1 + $0x3] ss:$0 sm:$0xff] }
  0x1a   : >> { %vm1049_vm9 = vmpackc.low %vm689_vm7, %vm1105_vm8 }
  0x1d   : >> { %317 = vperm.xlu1 %1086, %v971_v19   ;;  %312 = vperm.xlu0 %1085, %v970_v20  }
  0x21   : >> { %322 = vperm.xlu1 %1086, %v972_v21   ;;  %224 = vperm.xlu0 %1085, %v205_v22  }
  0x25   : >> { %408 = vperm.xlu1 %1086, %v979_v23   ;;  %403 = vperm.xlu0 %1085, %v978_v24  }
  0x29   : >> { %418 = vperm.xlu1 %1086, %v981_v25   ;;  %413 = vperm.xlu0 %1085, %v980_v26  }
  0x2d   : >> { %611 = vperm.xlu1 %1086, %v988_v27   ;;  %606 = vperm.xlu0 %1085, %v987_v28  }
  0x31   : >> { %621 = vperm.xlu1 %1086, %v990_v29   ;;  %616 = vperm.xlu0 %1085, %v989_v30  }
  0x94   : >> { %v220_v32 = vpop.permute.xlu1 %219  ;;  %v210_v33 = vpop.permute.xlu0 %209 }
  0x95   : >> { %v1179_v35 = vmul.f32 %v1171_v31, %v220_v32  ;;  %v1192_v38 = vmul.f32 %v1176_v34, %v220_v32  ;;  %v244_v39 = vmul.f32 %v1171_v31, %v210_v33  ;;  %v273_v41 = vmul.f32 %v1176_v34, %v210_v33 }
  0x96   : >> { %v1202_v44 = vmul.f32 %v1189_v37, %v220_v32  ;;  %v231_v48 = vmul.f32 %v1189_v37, %v210_v33 }
  0x97   : >> { %v256_v47 = vrot.slane %v1179_v35, 1  ;;  %v285_v51 = vrot.slane %v1192_v38, 2  ;;  %v253_v52 = vrot.slane %v244_v39, 1  ;;  %v282_v55 = vrot.slane %v273_v41, 2 }
  0x98   : >> { %v308_v42 = vpop.permute.xlu1 %307  ;;  %v215_v43 = vpop.permute.xlu0 %214 }
  0x99   : >> { %v1210_v46 = vmul.f32 %v1184_v36, %v308_v42  ;;  %v1215_v49 = vmul.f32 %v1198_v40, %v308_v42  ;;  %v245_v50 = vmul.f32 %v1171_v31, %v215_v43  ;;  %v1220_v53 = vmul.f32 %v1171_v31, %v308_v42 }
  0x9a   : >> { %v274_v54 = vmul.f32 %v1176_v34, %v215_v43  ;;  %v329_v56 = vmul.f32 %v1207_v45, %v308_v42  ;;  %v1225_v57 = vmul.f32 %v1176_v34, %v308_v42  ;;  %v1229_v61 = vmul.f32 %v1189_v37, %v308_v42 }
  0x9b   : >> { %v254_v58 = vrot.slane %v245_v50, 1  ;;  %v350_v60 = vrot.slane %v1210_v46, 1  ;;  %v232_v62 = vmul.f32 %v1189_v37, %v215_v43  ;;  %v378_v1 = vrot.slane %v1215_v49, 2 }
  0x9c   : >> { %v318_v59 = vpop.permute.xlu1 %317  ;;  %v283_v63 = vrot.slane %v274_v54, 2  ;;  %v313_v5 = vpop.permute.xlu0 %312  ;;  %v505_v6 = vrot.slane %v1220_v53, 1  ;;  %v528_v14 = vrot.slane %v1225_v57, 2 }
  0x9d   : >> { %v255_v2 = vsel %vm252_vm5, %v253_v52, %v254_v58  ;;  %v257_v3 = vsel %vm252_vm5, %v254_v58, %v256_v47  ;;  %v1238_v4 = vmul.f32 %v1171_v31, %v318_v59  ;;  %v344_v10 = vmul.f32 %v1184_v36, %v318_v59 }
  0x9e   : >> { %v264_v7 = vadd.f32 %v255_v2, %v231_v48  ;;  %v265_v8 = vadd.f32 %v257_v3, %v232_v62  ;;  %v284_v15 = vsel %vm281_vm6, %v282_v55, %v283_v63  ;;  %v286_v16 = vsel %vm281_vm6, %v283_v63, %v285_v51 }
  0x9f   : >> { %v372_v17 = vmul.f32 %v1198_v40, %v318_v59  ;;  %v1249_v19 = vmul.f32 %v1176_v34, %v318_v59  ;;  %v330_v20 = vmul.f32 %v1207_v45, %v313_v5  ;;  %v343_v21 = vmul.f32 %v1184_v36, %v313_v5 }
  0xa0   : >> { %v294_v18 = vadd.f32 %v286_v16, %v265_v8  ;;  %v323_v22 = vpop.permute.xlu1 %322  ;;  %v293_v23 = vadd.f32 %v284_v15, %v264_v7  ;;  %v1254_v24 = vmul.f32 %v1207_v45, %v318_v59  ;;  %v1535_v25 = vrot.slane %v1238_v4, 1  ;;  %v225_v50 = vpop.permute.xlu0 %224 }
  0xa1   : >> { %v1258_v26 = vmul.f32 %v1171_v31, %v313_v5  ;;  %v353_v27 = vrot.slane %v344_v10, 1  ;;  %v351_v29 = vrot.slane %v343_v21, 1  ;;  %v371_v30 = vmul.f32 %v1198_v40, %v313_v5 }
  0xa2   : >> { %v334_v28 = vadd.f32 %v330_v20, %v294_v18  ;;  %v1263_v33 = vmul.f32 %v1176_v34, %v313_v5  ;;  %v1266_v39 = vmul.f32 %v1184_v36, %v323_v22  ;;  %v1269_v41 = vmul.f32 %v1198_v40, %v323_v22 }
  0xa3   : >> { %v506_v32 = vrot.slane %v1258_v26, 1  ;;  %v381_v42 = vrot.slane %v372_v17, 2  ;;  %v1272_v43 = vmul.f32 %v1189_v37, %v318_v59  ;;  %v1536_v46 = vrot.slane %v1249_v19, 2  ;;  %v1303_v17 = vld [vmem:[%s1532_s1 + $0x6] ss:$0 sm:$0xff] }
  0xa4   : >> { %v490_v48 = vmul.f32 %v1189_v37, %v313_v5  ;;  %v333_v52 = vadd.f32 %v329_v56, %v293_v23  ;;  %v383_v55 = vrot.slane %v1269_v41, 2  ;;  %v1283_v58 = vmul.f32 %v1171_v31, %v323_v22 }
  0xa5   : >> { %v509_v54 = vsel %vm252_vm5, %v506_v32, %v1535_v25  ;;  %v354_v59 = vsel %vm252_vm5, %v351_v29, %v353_v27  ;;  %v379_v62 = vrot.slane %v371_v30, 2  ;;  %v1287_v63 = vmul.f32 %v1176_v34, %v323_v22 }
  0xa6   : >> { %v355_v2 = vrot.slane %v1266_v39, 1  ;;  %v352_v56 = vsel %vm252_vm5, %v350_v60, %v351_v29  ;;  %v362_v3 = vadd.f32 %v354_v59, %v334_v28  ;;  %v529_v5 = vrot.slane %v1263_v33, 2  ;;  %v409_v60 = vpop.permute.xlu1 %408  ;;  %v404_v39 = vpop.permute.xlu0 %403 }
  0xa7   : >> { %v247_v7 = vmul.f32 %v1171_v31, %v225_v50  ;;  %v1293_v8 = vadd.f32 %v509_v54, %v490_v48  ;;  %v1296_v10 = vmul.f32 %v1189_v37, %v323_v22  ;;  %v332_v15 = vmul.f32 %v1207_v45, %v323_v22  ;;  %v1313_v22 = vld [vmem:[%s1532_s1 + $0x7] ss:$0 sm:$0xff] }
  0xa8   : >> { %v276_v16 = vmul.f32 %v1176_v34, %v225_v50  ;;  %v384_v31 = vsel %vm281_vm6, %v381_v42, %v383_v55  ;;  %v234_v20 = vmul.f32 %v1189_v37, %v225_v50  ;;  %v1318_v34 = vld [vmem:[%s1532_s1 + $0x8] ss:$0 sm:$0xff]  ;;  %v356_v28 = vsel %vm252_vm5, %v353_v27, %v355_v2 }
  0xa9   : >> { %v258_v21 = vrot.slane %v247_v7, 1  ;;  %v382_v30 = vsel %vm281_vm6, %v379_v62, %v381_v42  ;;  %v426_v54 = vmul.f32 %v1303_v17, %v409_v60  ;;  %v1329_v7 = vmul.f32 %v1313_v22, %v409_v60 }
  0xaa   : >> { %v287_v29 = vrot.slane %v276_v16, 2  ;;  %v390_v50 = vadd.f32 %v382_v30, %v362_v3  ;;  %v1332_v25 = vmul.f32 %v1318_v34, %v409_v60  ;;  %v1335_v27 = vmul.f32 %v1184_v36, %v409_v60  ;;  %v1352_v30 = vpop.permute.xlu1 %418 }
  0xab   : >> { %v259_v37 = vsel %vm252_vm5, %v256_v47, %v258_v21  ;;  %v267_v48 = vadd.f32 %v258_v21, %v234_v20  ;;  %v1341_v42 = vmul.f32 %v1198_v40, %v409_v60  ;;  %v361_v3 = vadd.f32 %v352_v56, %v333_v52 }
  0xac   : >> { %v266_v59 = vadd.f32 %v259_v37, %v1202_v44  ;;  %v288_v35 = vsel %vm281_vm6, %v285_v51, %v287_v29  ;;  %v380_v44 = vsel %vm281_vm6, %v378_v1, %v379_v62  ;;  %v1347_v20 = vmul.f32 %v1313_v22, %v404_v39  ;;  %v1361_v62 = vpop.permute.xlu0 %413 }
  0xad   : >> { %v296_v47 = vadd.f32 %v287_v29, %v267_v48  ;;  %v1350_v21 = vmul.f32 %v1318_v34, %v404_v39  ;;  %v544_v51 = vmul.f32 %v1207_v45, %v409_v60  ;;  %v389_v29 = vadd.f32 %v380_v44, %v361_v3 }
  0xae   : >> { %v295_v16 = vadd.f32 %v288_v35, %v266_v59  ;;  %v425_v37 = vmul.f32 %v1303_v17, %v404_v39  ;;  %v1357_v56 = vadd.f32 %v426_v54, %v390_v50  ;;  %v560_v48 = vrot.slane %v1335_v27, 1 }
  0xaf   : >> { %v336_v38 = vadd.f32 %v332_v15, %v296_v47  ;;  %v583_v59 = vrot.slane %v1341_v42, 2  ;;  %v543_v15 = vmul.f32 %v1207_v45, %v404_v39  ;;  %v551_v60 = vmul.f32 %v1184_v36, %v404_v39 }
  0xb0   : >> { %v335_v52 = vadd.f32 %v1254_v24, %v295_v16  ;;  %v1369_v54 = vadd.f32 %v425_v37, %v389_v29  ;;  %v574_v3 = vmul.f32 %v1198_v40, %v404_v39  ;;  %v1374_v16 = vmul.f32 %v1303_v17, %v1352_v30  ;;  %v612_v39 = vpop.permute.xlu1 %611 }
  0xb1   : >> { %v364_v47 = vadd.f32 %v355_v2, %v336_v38  ;;  %v1378_v27 = vmul.f32 %v1313_v22, %v1361_v62  ;;  %v1386_v2 = vmul.f32 %v1184_v36, %v1361_v62  ;;  %v1390_v42 = vmul.f32 %v1198_v40, %v1361_v62 }
  0xb2   : >> { %v363_v35 = vadd.f32 %v356_v28, %v335_v52  ;;  %v1382_v28 = vmul.f32 %v1318_v34, %v1361_v62  ;;  %v532_v44 = vsel %vm281_vm6, %v529_v5, %v1536_v46  ;;  %v559_v38 = vrot.slane %v551_v60, 1 }
  0xb3   : >> { %v1399_v29 = vmul.f32 %v1313_v22, %v1352_v30  ;;  %v427_v37 = vmul.f32 %v1303_v17, %v1361_v62  ;;  %v540_v52 = vadd.f32 %v532_v44, %v1293_v8  ;;  %v392_v1 = vadd.f32 %v383_v55, %v364_v47  ;;  %v607_v8 = vpop.permute.xlu0 %606 }
  0xb4   : >> { %v391_v50 = vadd.f32 %v384_v31, %v363_v35  ;;  %v562_v24 = vrot.slane %v1386_v2, 1  ;;  %v585_v49 = vrot.slane %v1390_v42, 2  ;;  %v582_v23 = vrot.slane %v574_v3, 2 }
  0xb5   : >> { %v548_v46 = vadd.f32 %v544_v51, %v540_v52  ;;  %v1409_v60 = vmul.f32 %v1313_v22, %v612_v39  ;;  %v507_v18 = vsel %vm252_vm5, %v505_v6, %v506_v32  ;;  %v449_v31 = vrot.slane %v1378_v27, 1 }
  0xb6   : >> { %v477_v41 = vrot.slane %v1382_v28, 2  ;;  %v563_v55 = vsel %vm252_vm5, %v560_v48, %v562_v24  ;;  %v516_v35 = vadd.f32 %v507_v18, %v1229_v61  ;;  %v625_v51 = vmul.f32 %v1303_v17, %v612_v39 }
  0xb7   : >> { %v571_v47 = vadd.f32 %v563_v55, %v548_v46  ;;  %v1422_v3 = vmul.f32 %v1318_v34, %v612_v39  ;;  %v530_v53 = vsel %vm281_vm6, %v528_v14, %v529_v5  ;;  %v1429_v6 = vadd.f32 %v427_v37, %v391_v50 }
  0xb8   : >> { %v586_v26 = vsel %vm281_vm6, %v583_v59, %v585_v49  ;;  %v539_v32 = vadd.f32 %v530_v53, %v516_v35  ;;  %v632_v61 = vmul.f32 %v1313_v22, %v607_v8  ;;  %v641_v46 = vrot.slane %v1409_v60, 1 }
  0xb9   : >> { %v561_v18 = vsel %vm252_vm5, %v559_v38, %v560_v48  ;;  %v655_v2 = vmul.f32 %v1318_v34, %v607_v8  ;;  %v1537_v57 = vrot.slane %v1283_v58, 1  ;;  %v594_v14 = vadd.f32 %v586_v26, %v571_v47  ;;  %v622_v38 = vpop.permute.xlu1 %621 }
  0xba   : >> { %v547_v5 = vadd.f32 %v543_v15, %v539_v32  ;;  %v640_v50 = vrot.slane %v632_v61, 1  ;;  %v546_v39 = vmul.f32 %v1207_v45, %v1352_v30  ;;  %v664_v44 = vrot.slane %v1422_v3, 2 }
  0xbb   : >> { %v519_v33 = vadd.f32 %v1537_v57, %v1296_v10  ;;  %v584_v37 = vsel %vm281_vm6, %v582_v23, %v583_v59  ;;  %v1538_v52 = vrot.slane %v1287_v63, 2  ;;  %v554_v48 = vmul.f32 %v1184_v36, %v1352_v30 }
  0xbc   : >> { %v570_v55 = vadd.f32 %v561_v18, %v547_v5  ;;  %v624_v10 = vmul.f32 %v1303_v17, %v607_v8  ;;  %v1452_v15 = vmul.f32 %v1318_v34, %v1352_v30  ;;  %v577_v35 = vmul.f32 %v1198_v40, %v1352_v30 }
  0xbd   : >> { %v542_v60 = vadd.f32 %v1538_v52, %v519_v33  ;;  %v663_v47 = vrot.slane %v655_v2, 2  ;;  %v451_v23 = vrot.slane %v1399_v29, 1  ;;  %v564_v3 = vrot.slane %v554_v48, 1 }
  0xbe   : >> { %v629_v53 = vadd.f32 %v625_v51, %v594_v14  ;;  %v593_v26 = vadd.f32 %v584_v37, %v570_v55  ;;  %v642_v36 = vsel %vm252_vm5, %v640_v50, %v641_v46  ;;  %v635_v32 = vmul.f32 %v1313_v22, %v622_v38  ;;  %v617_v14 = vpop.permute.xlu0 %616 }
  0xbf   : >> { %v550_v59 = vadd.f32 %v546_v39, %v542_v60  ;;  %v587_v8 = vrot.slane %v577_v35, 2  ;;  %v627_v18 = vmul.f32 %v1303_v17, %v622_v38  ;;  %v1539_v33 = vrot.slane %v1238_v4, 1 }
  0xc0   : >> { %v628_v30 = vadd.f32 %v624_v10, %v593_v26  ;;  %v479_v29 = vrot.slane %v1452_v15, 2  ;;  %v432_v51 = vadd.f32 %v1374_v16, %v392_v1  ;;  %v645_v50 = vrot.slane %v635_v32, 1 }
  0xc1   : >> { %v573_v61 = vadd.f32 %v564_v3, %v550_v59  ;;  %v511_v40 = vsel %vm252_vm5, %v1539_v33, %v1537_v57  ;;  %v1540_v39 = vmov %v1538_v52  ;;  %v1541_v37 = vrot.slane %v1249_v19, 2 }
  0xc2   : >> { %v518_v2 = vadd.f32 %v511_v40, %v1272_v43  ;;  %v545_v4 = vmul.f32 %v1207_v45, %v1361_v62  ;;  %v651_v52 = vadd.f32 %v642_v36, %v628_v30  ;;  %v658_v60 = vmul.f32 %v1318_v34, %v622_v38 }
  0xc3   : >> { %v596_v5 = vadd.f32 %v587_v8, %v573_v61  ;;  %v534_v58 = vsel %vm281_vm6, %v1541_v37, %v1540_v39  ;;  %v565_v1 = vsel %vm252_vm5, %v562_v24, %v564_v3  ;;  %v634_v43 = vmul.f32 %v1313_v22, %v617_v14 }
  0xc4   : >> { %v541_v48 = vadd.f32 %v534_v58, %v518_v2  ;;  %v657_v55 = vmul.f32 %v1318_v34, %v617_v14  ;;  %v1542_v63 = vrot.slane %v1329_v7, 1  ;;  %v1543_v19 = vrot.slane %v1347_v20, 1 }
  0xc5   : >> { %v631_v16 = vadd.f32 %v627_v18, %v596_v5  ;;  %v665_v15 = vsel %vm281_vm6, %v663_v47, %v664_v44  ;;  %v460_v45 = vadd.f32 %v451_v23, %v432_v51  ;;  %v643_v22 = vrot.slane %v634_v43, 1 }
  0xc6   : >> { %v448_v10 = vsel %vm252_vm5, %v1543_v19, %v1542_v63  ;;  %v549_v62 = vadd.f32 %v545_v4, %v541_v48  ;;  %v1544_v38 = vmov %v1542_v63  ;;  %v666_v59 = vrot.slane %v657_v55, 2 }
  0xc7   : >> { %v450_v24 = vsel %vm252_vm5, %v1544_v38, %v449_v31  ;;  %v654_v35 = vadd.f32 %v645_v50, %v631_v16  ;;  %v457_v34 = vadd.f32 %v448_v10, %v1369_v54  ;;  %v668_v3 = vrot.slane %v658_v60, 2 }
  0xc8   : >> { %v572_v26 = vadd.f32 %v565_v1, %v549_v62  ;;  %v626_v20 = vmul.f32 %v1303_v17, %v617_v14  ;;  %v458_v36 = vadd.f32 %v450_v24, %v1357_v56  ;;  %v674_v47 = vadd.f32 %v665_v15, %v651_v52 }
  0xc9   : >> { %v588_v32 = vsel %vm281_vm6, %v585_v49, %v587_v8  ;;  %v644_v7 = vsel %vm252_vm5, %v641_v46, %v643_v22  ;;  %v1545_v61 = vrot.slane %v1332_v25, 2  ;;  %v1546_v18 = vrot.slane %v1350_v21, 2 }
  0xca   : >> { %v595_v54 = vadd.f32 %v588_v32, %v572_v26  ;;  %v652_v33 = vadd.f32 %v644_v7, %v629_v53  ;;  %v452_v49 = vsel %vm252_vm5, %v449_v31, %v451_v23  ;;  %v677_v42 = vadd.f32 %v668_v3, %v654_v35 }
  0xcb   : >> { %v476_v57 = vsel %vm281_vm6, %v1546_v18, %v1545_v61  ;;  %v1547_v17 = vmov %v1545_v61  ;;  %v646_v46 = vsel %vm252_vm5, %v643_v22, %v645_v50  ;;  %v667_v8 = vsel %vm281_vm6, %v664_v44, %v666_v59 }
  0xcc   : >> { %v478_v56 = vsel %vm281_vm6, %v1547_v17, %v477_v41  ;;  %v485_v21 = vadd.f32 %v476_v57, %v457_v34  ;;  %v630_v40 = vadd.f32 %v626_v20, %v595_v54  ;;  %v675_v30 = vadd.f32 %v667_v8, %v652_v33 }
  0xcd   : >> { %v486_v51 = vadd.f32 %v478_v56, %v458_v36  ;;  %v459_v53 = vadd.f32 %v452_v49, %v1429_v6  ;;  %v488_v2 = vadd.f32 %v479_v29, %v460_v45  ;;  %v669_v39 = vsel %vm281_vm6, %v666_v59, %v668_v3 }
  0xce   : >> { %v653_v14 = vadd.f32 %v646_v46, %v630_v40  ;;  %v678_v25 = vmax.f32 %v485_v21, %v674_v47  ;;  %v480_v27 = vsel %vm281_vm6, %v477_v41, %v479_v29 }
  0xcf   : >> { %v679_v5 = vmax.f32 %v486_v51, %v675_v30  ;;  %v681_v31 = vmax.f32 %v488_v2, %v677_v42  ;;  %v487_v50 = vadd.f32 %v480_v27, %v459_v53 }
  0xd0   : >> { %v676_v23 = vadd.f32 %v669_v39, %v653_v14 }
  0xd1   : >> { %v1044_v44 = vpack.c.bf16 %v679_v5, %v678_v25 }
  0xd2   : >> { %v680_v37 = vmax.f32 %v487_v50, %v676_v23 }
  0xd3   : >> { %1045 = vmatprep.subr.bf16.mxu0 %v1044_v44  ;;  %1055 = vmatprep.subr.bf16.mxu1 %v1044_v44 }
  0xd4   : >> { %1047 = vmatpush3.bf16.msra.mxu0 %v1044_v44  ;;  %1057 = vmatpush3.bf16.msra.mxu1 %v1044_v44  ;;  %v1048_v6 = vpack.c.bf16 %v681_v31, %v680_v37 }
  0xd6   : >> { %1050 = vmatprep.subr.msk.bf16.mxu0 %vm1049_vm9, %v1048_v6  ;;  %1060 = vmatprep.subr.msk.bf16.mxu1 %vm1049_vm9, %v1048_v6 }
  0xd8   : >> { %1053 = vmatpush3.bf16.msk.msra.mxu0 %vm1049_vm9, %v1048_v6  ;;  %1063 = vmatpush3.bf16.msk.msra.mxu1 %vm1049_vm9, %v1048_v6 }
  0xdb   : >> { %1031 = vmatmul.mubr.msk.f32.vlgmr.msra.gmra.mrb[0].mxu0 %vm682_vm4, %v1151_v11  ;;  %1042 = vmatmul.mubr.msk.f32.vlgmr.msra.gmra.mrb[0].mxu1 %vm682_vm4, %v1155_v13 }
 0x1ae   : >> { %v1032_v28 = vpop.f32.mrb[0].mxu0  ;;  %v1043_v41 = vpop.f32.mrb[0].mxu1 }
 0x1af   : >> { %v850_v29 = vmax.f32 %v1032_v28, %v1043_v41  ;;  %v759_v58 = vpop.f32.mrb[1].mxu0  ;;  %v840_v4 = vpop.f32.mrb[1].mxu1 }
 0x1b0   : >> { %v849_v52 = vmax.f32 %v759_v58, %v840_v4 }
 0x1b1   : >> { %v858_v60 = vadd.f32 %v1137_v0, %v850_v29 }
 0x1b2   : >> { %v857_v48 = vadd.f32 %v1137_v0, %v849_v52  ;;  %197 = sbr.rel (!%p195_p4) target bundleno = 18 (0x12), region = 74 }
 0x1b3   : >> { %v860_v1 = vmax.f32 %v858_v60, 0.0 }
 0x1b4   : >> { %v859_v16 = vmax.f32 %v857_v48, 0.0 }
 0x1b5   : >> { %v1008_v43 = vpack.c.bf16 %v860_v1, %v860_v1 }
 0x1b6   : >> { %v1007_v55 = vpack.c.bf16 %v859_v16, %v859_v16 }
 0x1b7   : >> { %874 = vst.msk [vmem:[%s870_s21 + $0x4] sm:$0x7] %vm873_vm10, %v1008_v43 }
 0x1b8   : >> { %872 = vst.msk [vmem:[%s870_s21] sm:$0xf] %vm871_vm11, %v1007_v55 }
 0x1b9 PF: > { %s13_s12 = sadd.s32 1, %s1097_s12  }
 0x1ba   : > { %p10_p5 = scmp.ge.s32.totalorder %s13_s12, 4  }
 0x1bc   :  { %12 = sbr.rel (!%p10_p5) target bundleno = 1 (0x1), region = 85 }

// kernel: forward.8
= control target key start
LH: loop header
LB: loop body
LE: loop exit
PB: predicated region body
PF: predicated region fallthrough
CT: control target
= control target key end

     0   :  { %s748_s12 = smov 0   ;;  %s855_s0 = inlined_call_operand.vmem [shape: bf16[2,9,9,32], index: 0, kind: input, shape index: {}]   ;;  %s856_s1 = inlined_call_operand.vmem [shape: bf16[288,32], index: 1, kind: input, shape index: {}]   ;;  %s857_s2 = inlined_call_operand.vmem [shape: f32[1,32], index: 2, kind: input, shape index: {}]   ;;  %s858_s3 = inlined_call_operand.vmem [shape: bf16[2,7,7,32], index: 3, kind: output, shape index: {}]  }
   0x1 LB: > { %s582_s13 = sadd.s32 4294967295, %s717_s12   ;;  %p586_p0 = scmp.ge.s32.totalorder %s717_s12, 1  ;;  %s717_s12 = sphi %s748_s12, %s13_s12  }
   0x2   : > { %p137_p1 = scmp.lt.s32.totalorder %s717_s12, 3 }
   0x4   : > { %p138_p2 = pnand %p586_p0, %p137_p1 }
   0x5   : > { %p161_p3 = scmp.lt.s32.totalorder (!%p138_p2), %s582_s13, 1  ;;  %v759_v0 = vld [vmem:[%s857_s2] ss:$0 sm:$0xff] (!%p138_p2)  ;;  %s771_s24 = smov (!%p138_p2), 0  }
   0x6   : > { %141 = sbr.rel (%p138_p2) target bundleno = 376 (0x178), region = 32 }
   0xd   : > { %s860_s13 = smov (!%p161_p3, %s582_s13), 1 }
   0xe   : > { %s660_s16 = smul.u32 72, %s860_s13 }
   0xf   : > { %s661_s17 = smul.u32 28, %s860_s13 }
  0x10   : > { %s764_s20 = scalar_lea.vmem %s855_s0, %s660_s16 }
  0x11   : > { %s769_s23 = scalar_lea.vmem %s858_s3, %s661_s17 }
  0x12 LB: >> { %v689_v1 = vld [vmem:[%s856_s1 + $0x40] sm:$0xff]   ;;  %s626_s29 = sshll.u32 %s721_s24, 3  ;;  %v691_v3 = vld [vmem:[%s856_s1 + $0x48] sm:$0xff]   ;;  %s723_s8 = smov 64   ;;  %v693_v15 = vld [vmem:[%s856_s1 + $0x50] sm:$0xff]   ;;  %v724_v17 = vmov 0.0   ;;  %s721_s24 = sphi %s771_s24, %s178_s24  }
  0x13   : >> { %v690_v2 = vld [vmem:[%s856_s1] sm:$0xff]   ;;  %627 = vmatprep.subr.bf16.mxu0 %v689_v1  ;;  %s784_s30 = scalar_lea.vmem %s764_s20, %s626_s29  ;;  %v692_v13 = vld [vmem:[%s856_s1 + $0x8] sm:$0xff]   ;;  %v694_v16 = vld [vmem:[%s856_s1 + $0x10] sm:$0xff]   ;;  %652 = vmatprep.subr.bf16.mxu1 %v724_v17  ;;  %s725_s16 = smov 32   ;;  %vm727_vm0 = vmmov 0   ;;  %vm250_vm1 = vcmask 261120  }
  0x14   : >> { %628 = vmatpush3.bf16.msra.mxu0 %v690_v2  ;;  %v595_v4 = vld [vmem:[%s784_s30 + $0x10] sm:$0xf]  ;;  %v592_v5 = vld [vmem:[%s784_s30 + $0x8] sm:$0xf]  ;;  %v593_v7 = vld [vmem:[%s784_s30 + $0xc] sm:$0x1]  ;;  %656 = vmatprep.mubr.msk.bf16.mxu1 %vm727_vm0, %v724_v17 }
  0x15   : >> { %v601_v6 = vcombine.low %v595_v4, %v595_v4  ;;  %v793_v8 = vld [vmem:[%s784_s30] sm:$0xf]  ;;  %v183_v9 = vld [vmem:[%s784_s30 + $0x4] sm:$0x1]  ;;  %629 = vmatprep.subr.bf16.mxu0 %v691_v3  ;;  %v600_v10 = vcombine.low %v592_v5, %v593_v7  ;;  %v695_v23 = vld [vmem:[%s856_s1 + $0x58] sm:$0xff]   ;;  %v599_v26 = vcombine.low %v592_v5, %v592_v5  ;;  %s726_s22 = smov 96  }
  0x16   : >> { %v598_v11 = vcombine.low %v793_v8, %v183_v9  ;;  %v597_v12 = vcombine.low %v793_v8, %v793_v8  ;;  %v696_v28 = vld [vmem:[%s856_s1 + $0x18] sm:$0xff]   ;;  %v697_v29 = vld [vmem:[%s856_s1 + $0x60] sm:$0xff]   ;;  %v596_v31 = vld [vmem:[%s784_s30 + $0x14] sm:$0x1]  ;;  %vm254_vm2 = vcmask 523264   ;;  %vm257_vm3 = vcmask 785408  }
  0x17   : >> { %235 = vrot.lane.b32.xlu1 %v601_v6, %s723_s8  ;;  %v240_v14 = vshll.u32 %v601_v6, 16  ;;  %v229_v18 = vrot.slane %v600_v10, 1  ;;  %v238_v22 = vshrl.u32 %v601_v6, 16  ;;  %v698_v32 = vld [vmem:[%s856_s1 + $0x20] sm:$0xff]   ;;  %v699_v33 = vld [vmem:[%s856_s1 + $0x68] sm:$0xff]   ;;  %v602_v35 = vcombine.low %v595_v4, %v596_v31  ;;  %v701_v37 = vld [vmem:[%s856_s1 + $0x70] sm:$0xff]  }
  0x18   : >> { %v211_v19 = vrot.slane %v598_v11, 1  ;;  %v200_v20 = vshrl.u32 %v597_v12, 16  ;;  %v202_v21 = vshll.u32 %v597_v12, 16  ;;  %630 = vmatpush3.bf16.msra.mxu0 %v692_v13  ;;  %v703_v34 = vld [vmem:[%s856_s1 + $0x80] sm:$0xff]   ;;  %v700_v36 = vld [vmem:[%s856_s1 + $0x28] sm:$0xff]   ;;  %v702_v40 = vld [vmem:[%s856_s1 + $0x30] sm:$0xff]  }
  0x19   : >> { %631 = vmatprep.subr.bf16.mxu0 %v693_v15  ;;  %230 = vrot.lane.b32.xlu0 %v229_v18, %s725_s16  ;;  %v242_v25 = vrot.slane %v240_v14, 1  ;;  %v706_v38 = vld [vmem:[%s856_s1 + $0x88] sm:$0xff]   ;;  %v249_v39 = vrot.slane %v602_v35, 1  ;;  %v704_v41 = vld [vmem:[%s856_s1 + $0x78] sm:$0xff]   ;;  %v222_v43 = vshll.u32 %v599_v26, 16  ;;  %v220_v45 = vshrl.u32 %v599_v26, 16 }
  0x1a   : >> { %v204_v24 = vrot.slane %v202_v21, 1  ;;  %653 = vmatpush3.bf16.msra.mxu1 %v703_v34  ;;  %v705_v42 = vld [vmem:[%s856_s1 + $0x38] sm:$0xff]   ;;  %s623_s17 = sshll.u32 %s721_s24, 2  ;;  %vm506_vm4 = vcmask 257024   ;;  %vm507_vm5 = vsmask.f32 3328 }
  0x1b   : >> { %212 = vrot.lane.b32.xlu1 %v211_v19, %s723_s8  ;;  %v243_v30 = vor.u32 %v242_v25, %v238_v22  ;;  %654 = vmatprep.subr.bf16.mxu1 %v724_v17  ;;  %v224_v46 = vrot.slane %v222_v43, 1  ;;  %s505_s18 = scalar_lea.vmem %s769_s23, %s623_s17  ;;  %vm508_vm6 = vmand %vm506_vm4, %vm507_vm5  ;;  %s178_s24 = sadd.s32 1, %s721_s24  }
  0x1c   : >> { %v205_v27 = vor.u32 %v204_v24, %v200_v20  ;;  %632 = vmatpush3.bf16.msra.mxu0 %v694_v16  ;;  %p175_p4 = scmp.ge.s32.totalorder %s178_s24, 7  }
  0x1d   : >> { %633 = vmatprep.subr.bf16.mxu0 %v695_v23  ;;  %v225_v48 = vor.u32 %v224_v46, %v220_v45 }
  0x1e   : >> { %206 = vrot.lane.b32.xlu0 %v205_v27, %s725_s16  ;;  %655 = vmatpush3.bf16.msra.mxu1 %v706_v38 }
  0x1f   : >> { %217 = vrot.lane.b32.xlu1 %v599_v26, %s726_s22 }
  0x20   : >> { %634 = vmatpush3.bf16.msra.mxu0 %v696_v28 }
  0x21   : >> { %635 = vmatprep.subr.bf16.mxu0 %v697_v29  ;;  %657 = vmatmul.mubr.msk.bf16.vlgmr.msra.gmra.mrb[0].mxu1 %vm250_vm1, %v249_v39 }
  0x22   : >> { %244 = vrot.lane.b32.xlu0 %v243_v30, %s726_s22 }
  0x24   : >> { %636 = vmatpush3.bf16.msra.mxu0 %v698_v32 }
  0x25   : >> { %637 = vmatprep.subr.bf16.mxu0 %v699_v33 }
  0x28   : >> { %638 = vmatpush3.bf16.msra.mxu0 %v700_v36 }
  0x29   : >> { %639 = vmatprep.subr.bf16.mxu0 %v701_v37 }
  0x2c   : >> { %640 = vmatpush3.bf16.msra.mxu0 %v702_v40 }
  0x2d   : >> { %641 = vmatprep.subr.bf16.mxu0 %v704_v41 }
  0x30   : >> { %642 = vmatpush3.bf16.msra.mxu0 %v705_v42 }
  0x89   : >> { %v236_v44 = vpop.permute.xlu1 %235 }
  0x8b   : >> { %v231_v47 = vpop.permute.xlu0 %230 }
  0x8c   : >> { %v263_v51 = vsel %vm250_vm1, %v225_v48, %v231_v47 }
  0x8d   : >> { %v213_v49 = vpop.permute.xlu1 %212  ;;  %v265_v56 = vsel %vm254_vm2, %v263_v51, %v236_v44 }
  0x90   : >> { %v207_v50 = vpop.permute.xlu0 %206 }
  0x91   : >> { %v253_v52 = vsel %vm250_vm1, %v793_v8, %v207_v50  ;;  %v218_v53 = vpop.permute.xlu1 %217  ;;  %v509_v8 = vld [vmem:[%s505_s18] sm:$0xf] }
  0x92   : >> { %v256_v54 = vsel %vm254_vm2, %v253_v52, %v213_v49 }
  0x93   : >> { %v259_v58 = vsel %vm257_vm3, %v256_v54, %v218_v53 }
  0x94   : >> { %v245_v55 = vpop.permute.xlu0 %244 }
  0x95   : >> { %v267_v57 = vsel %vm257_vm3, %v265_v56, %v245_v55 }
  0x96   : >> { %454 = vmatprep.mubr.bf16.mxu0 %v267_v57 }
  0x97   : >> { %455 = vmatmul.mubr.bf16.vlgmr.msra.gmra.mrb[0].mxu0 %v259_v58 }
  0xf4   : >> { %v496_v59 = vpop.f32.mrb[0].mxu1 }
  0xf5   : >> { %v658_v60 = vpop.f32.mrb[1].mxu1 }
  0xf6   : >> { %v499_v61 = vpop.f32.mrb[2].mxu1 }
  0xf7   : >> { %v659_v62 = vpop.f32.mrb[3].mxu1 }
 0x16a   : >> { %v643_v63 = vpop.f32.mrb[0].mxu0 }
 0x16b   : >> { %v644_v1 = vpop.f32.mrb[1].mxu0 }
 0x16c   : >> { %v645_v2 = vadd.f32 %v644_v1, %v643_v63  ;;  %v646_v3 = vpop.f32.mrb[2].mxu0 }
 0x16d   : >> { %v647_v4 = vpop.f32.mrb[3].mxu0 }
 0x16e   : >> { %v457_v5 = vadd.f32 %v645_v2, %v759_v0 }
 0x170   : >> { %v497_v6 = vadd.f32 %v496_v59, %v457_v5 }
 0x171   : > { %177 = sbr.rel (!%p175_p4) target bundleno = 18 (0x12), region = 73 }
 0x172   : >> { %v502_v7 = vmax.f32 %v497_v6, 0.0 }
 0x174   : >> { %v503_v9 = vpack.c.bf16 %v502_v7, %v502_v7 }
 0x176   : >> { %v510_v10 = vsel %vm508_vm6, %v503_v9, %v509_v8 }
 0x177   : >> { %511 = vst [vmem:[%s505_s18] sm:$0xf] %v510_v10 }
 0x178 PF: > { %s13_s12 = sadd.s32 1, %s717_s12  }
 0x179   : > { %p10_p5 = scmp.ge.s32.totalorder %s13_s12, 4  }
 0x17b   :  { %12 = sbr.rel (!%p10_p5) target bundleno = 1 (0x1), region = 84 }

// kernel: forward.7
= control target key start
LH: loop header
LB: loop body
LE: loop exit
PB: predicated region body
PF: predicated region fallthrough
CT: control target
= control target key end

     0   :  { %s1133_s12 = smov 0   ;;  %s1308_s0 = inlined_call_operand.vmem [shape: bf16[2,16,16,32], index: 0, kind: input, shape index: {}]   ;;  %s1309_s1 = inlined_call_operand.vmem [shape: bf16[288,32], index: 1, kind: input, shape index: {}]   ;;  %s1310_s2 = inlined_call_operand.vmem [shape: f32[1,32], index: 2, kind: input, shape index: {}]   ;;  %s1311_s3 = inlined_call_operand.vmem [shape: bf16[2,7,7,32], index: 3, kind: output, shape index: {}]  }
   0x1 LB: > { %s885_s13 = sadd.s32 4294967295, %s1099_s12   ;;  %p889_p0 = scmp.ge.s32.totalorder %s1099_s12, 1  ;;  %s1099_s12 = sphi %s1133_s12, %s13_s12  }
   0x2   : > { %p137_p1 = scmp.lt.s32.totalorder %s1099_s12, 3 }
   0x4   : > { %p138_p2 = pnand %p889_p0, %p137_p1 }
   0x5   : > { %p161_p3 = scmp.lt.s32.totalorder (!%p138_p2), %s885_s13, 1  ;;  %v1144_v0 = vld [vmem:[%s1310_s2] ss:$0 sm:$0xff] (!%p138_p2)  ;;  %v173_v1 = vlaneseq (!%p138_p2)  ;;  %v1105_v6 = vmov (!%p138_p2), 0.0   ;;  %s1160_s24 = smov (!%p138_p2), 0  }
   0x6   : > { %141 = sbr.rel (%p138_p2) target bundleno = 607 (0x25f), region = 32 }
   0x7   : > { %v174_v2 = vshrl.u32 (!%p138_p2), %v173_v1, 7  ;;  %v176_v3 = vand.u32 (!%p138_p2), 127, %v173_v1 }
   0x9   : > { %v177_v4 = vmul.u32 (!%p138_p2), 2, %v174_v2 }
   0xb   : > { %vm178_vm0 = vcmp.eq.s32.totalorder (!%p138_p2), %v176_v3, %v177_v4  ;;  %v181_v5 = vadd.s32 (!%p138_p2), 1, %v177_v4 }
   0xc   : > { %v1156_v7 = vsel (!%p138_p2), %vm178_vm0, 1.0, %v1105_v6 }
   0xd   : > { %s1313_s13 = smov (!%p161_p3, %s885_s13), 1  ;;  %vm182_vm1 = vcmp.eq.s32.totalorder %v176_v3, %v181_v5 }
   0xe   : > { %s942_s16 = sshll.u32 %s1313_s13, 7  ;;  %s1042_s17 = smul.u32 28, %s1313_s13  ;;  %v1158_v8 = vsel %vm182_vm1, 1.0, %v1105_v6 }
   0xf   : > { %s1149_s20 = scalar_lea.vmem %s1308_s0, %s942_s16 }
  0x10   : > { %s1154_s23 = scalar_lea.vmem %s1311_s3, %s1042_s17 }
  0x11 LB: >> { %v1106_v9 = vmov 0.0   ;;  %v1169_v10 = vld [vmem:[%s1309_s1 + $0x80] sm:$0xff]   ;;  %s944_s27 = sshll.u32 %s1103_s24, 4  ;;  %vm1107_vm2 = vmmov 0   ;;  %s1108_s6 = smov 64   ;;  %v1203_v24 = vld [vmem:[%s1309_s1 + $0x88] sm:$0xff]   ;;  %s1103_s24 = sphi %s1160_s24, %s190_s24  }
  0x12   : >> { %1004 = vmatprep.subr.bf16.mxu1 %v1106_v9  ;;  %v1072_v11 = vld [vmem:[%s1309_s1 + $0x40] sm:$0xff]   ;;  %s194_s5 = scalar_lea.vmem %s1149_s20, %s944_s27  ;;  %1008 = vmatprep.mubr.msk.bf16.mxu1 %vm1107_vm2, %v1106_v9  ;;  %s1109_s7 = smov 32   ;;  %v1075_v27 = vld [vmem:[%s1309_s1 + $0x48] sm:$0xff]   ;;  %vm260_vm3 = vcmask 261120   ;;  %v1077_v31 = vld [vmem:[%s1309_s1 + $0x50] sm:$0xff]   ;;  %vm263_vm4 = vcmask 523264  }
  0x13   : >> { %v1073_v12 = vld [vmem:[%s1309_s1] sm:$0xff]   ;;  %1005 = vmatpush3.bf16.msra.mxu1 %v1169_v10  ;;  %v1180_v13 = vld [vmem:[%s194_s5 + $0x10] sm:$0xff]   ;;  %948 = vmatprep.subr.bf16.mxu0 %v1072_v11  ;;  %v1183_v14 = vld [vmem:[%s194_s5 + $0x8] sm:$0xff]   ;;  %s1110_s10 = smov 96   ;;  %vm266_vm5 = vcmask 785408   ;;  %vm644_vm6 = vcmask 1045504  }
  0x14   : >> { %1006 = vmatprep.subr.bf16.mxu1 %v1106_v9  ;;  %949 = vmatpush3.bf16.msra.mxu0 %v1073_v12  ;;  %v1189_v15 = vld [vmem:[%s194_s5] sm:$0xff]   ;;  %v240_v16 = vrot.slane %v1183_v14, 1  ;;  %v236_v17 = vshll.u32 %v1183_v14, 16  ;;  %v259_v18 = vrot.slane %v1180_v13, 1  ;;  %v234_v20 = vshrl.u32 %v1183_v14, 16  ;;  %v1076_v28 = vld [vmem:[%s1309_s1 + $0x8] sm:$0xff]  }
  0x15   : >> { %248 = vrot.lane.b32.xlu1 %v1180_v13, %s1108_s6  ;;  %v217_v19 = vshll.u32 %v1189_v15, 16  ;;  %v223_v21 = vrot.slane %v1189_v15, 1  ;;  %v215_v22 = vshrl.u32 %v1189_v15, 16  ;;  %v253_v23 = vshll.u32 %v1180_v13, 16  ;;  %v1213_v29 = vld [vmem:[%s194_s5 + $0x18] sm:$0xff]   ;;  %950 = vmatprep.subr.bf16.mxu0 %v1075_v27  ;;  %v1078_v34 = vld [vmem:[%s1309_s1 + $0x10] sm:$0xff]  }
  0x16   : >> { %241 = vrot.lane.b32.xlu0 %v240_v16, %s1109_s7  ;;  %v238_v26 = vrot.slane %v236_v17, 1  ;;  %v251_v30 = vshrl.u32 %v1180_v13, 16  ;;  %v1079_v36 = vld [vmem:[%s1309_s1 + $0x58] sm:$0xff]   ;;  %v531_v38 = vshll.u32 %v1213_v29, 16  ;;  %v1081_v40 = vld [vmem:[%s1309_s1 + $0x60] sm:$0xff]   ;;  %v529_v41 = vshrl.u32 %v1213_v29, 16 }
  0x17   : >> { %v219_v25 = vrot.slane %v217_v19, 1  ;;  %1007 = vmatpush3.bf16.msra.mxu1 %v1203_v24  ;;  %v255_v33 = vrot.slane %v253_v23, 1  ;;  %v1080_v39 = vld [vmem:[%s1309_s1 + $0x18] sm:$0xff]   ;;  %v1082_v43 = vld [vmem:[%s1309_s1 + $0x20] sm:$0xff]   ;;  %v1083_v44 = vld [vmem:[%s1309_s1 + $0x68] sm:$0xff]   ;;  %vm1112_vm7 = vmmov 1  }
  0x18   : >> { %973 = vmatprep.subr.bf16.mxu1 %v1072_v11  ;;  %951 = vmatpush3.bf16.msra.mxu0 %v1076_v28  ;;  %v239_v35 = vor.u32 %v238_v26, %v234_v20  ;;  %v533_v42 = vrot.slane %v531_v38, 1  ;;  %v1084_v46 = vld [vmem:[%s1309_s1 + $0x28] sm:$0xff]   ;;  %v1085_v47 = vld [vmem:[%s1309_s1 + $0x70] sm:$0xff]   ;;  %v1087_v49 = vld [vmem:[%s1309_s1 + $0x78] sm:$0xff]   ;;  %v537_v11 = vrot.slane %v1213_v29, 1  ;;  %v1111_v20 = vmov 0.0|0.0  }
  0x19   : >> { %231 = vrot.lane.b32.xlu1 %v1183_v14, %s1110_s10  ;;  %v220_v32 = vor.u32 %v219_v25, %v215_v22  ;;  %952 = vmatprep.subr.bf16.mxu0 %v1077_v31  ;;  %v1230_v37 = vor.u32 %v255_v33, %v251_v30  ;;  %v1086_v48 = vld [vmem:[%s1309_s1 + $0x30] sm:$0xff]   ;;  %v1088_v50 = vld [vmem:[%s1309_s1 + $0x38] sm:$0xff]   ;;  %vm1036_vm8 = vmpackc.low %vm644_vm6, %vm1112_vm7  ;;  %vm640_vm9 = vcmask 113664   ;;  %vm803_vm10 = vcmask 257024  }
  0x1a   : >> { %519 = vrot.lane.b32.xlu0 %v259_v18, %s1109_s7  ;;  %1009 = vmatmul.mubr.msk.bf16.vlgmr.msra.gmra.mrb[0].mxu1 %vm260_vm3, %v259_v18  ;;  %v534_v45 = vor.u32 %v533_v42, %v529_v41  ;;  %vm804_vm11 = vsmask.f32 3328 }
  0x1b   : >> { %974 = vmatpush3.bf16.msra.mxu1 %v1073_v12  ;;  %vm805_vm12 = vmand %vm803_vm10, %vm804_vm11 }
  0x1c   : >> { %975 = vmatprep.subr.bf16.mxu1 %v1075_v27  ;;  %953 = vmatpush3.bf16.msra.mxu0 %v1078_v34 }
  0x1d   : >> { %224 = vrot.lane.b32.xlu1 %v223_v21, %s1108_s6  ;;  %954 = vmatprep.subr.bf16.mxu0 %v1079_v36 }
  0x1e   : >> { %221 = vrot.lane.b32.xlu0 %v220_v32, %s1109_s7 }
  0x1f   : >> { %976 = vmatpush3.bf16.msra.mxu1 %v1076_v28 }
  0x20   : >> { %977 = vmatprep.subr.bf16.mxu1 %v1077_v31  ;;  %955 = vmatpush3.bf16.msra.mxu0 %v1080_v39 }
  0x21   : >> { %513 = vrot.lane.b32.xlu1 %v239_v35, %s1109_s7  ;;  %956 = vmatprep.subr.bf16.mxu0 %v1081_v40 }
  0x22   : >> { %257 = vrot.lane.b32.xlu0 %v1230_v37, %s1110_s10 }
  0x23   : >> { %978 = vmatpush3.bf16.msra.mxu1 %v1078_v34 }
  0x24   : >> { %979 = vmatprep.subr.bf16.mxu1 %v1079_v36  ;;  %957 = vmatpush3.bf16.msra.mxu0 %v1082_v43 }
  0x25   : >> { %515 = vrot.lane.b32.xlu1 %v240_v16, %s1108_s6  ;;  %958 = vmatprep.subr.bf16.mxu0 %v1083_v44 }
  0x26   : >> { %526 = vrot.lane.b32.xlu0 %v1213_v29, %s1108_s6 }
  0x27   : >> { %980 = vmatpush3.bf16.msra.mxu1 %v1080_v39 }
  0x28   : >> { %981 = vmatprep.subr.bf16.mxu1 %v1081_v40  ;;  %959 = vmatpush3.bf16.msra.mxu0 %v1084_v46 }
  0x29   : >> { %517 = vrot.lane.b32.xlu1 %v1180_v13, %s1110_s10  ;;  %960 = vmatprep.subr.bf16.mxu0 %v1085_v47 }
  0x2a   : >> { %535 = vrot.lane.b32.xlu0 %v534_v45, %s1110_s10  ;;  %s939_s10 = sshll.u32 %s1103_s24, 2  ;;  %s190_s24 = sadd.s32 1, %s1103_s24  }
  0x2b   : >> { %982 = vmatpush3.bf16.msra.mxu1 %v1082_v43  ;;  %s802_s18 = scalar_lea.vmem %s1154_s23, %s939_s10  ;;  %p187_p4 = scmp.ge.s32.totalorder %s190_s24, 7  }
  0x2c   : >> { %983 = vmatprep.subr.bf16.mxu1 %v1083_v44  ;;  %961 = vmatpush3.bf16.msra.mxu0 %v1086_v48 }
  0x2d   : >> { %962 = vmatprep.subr.bf16.mxu0 %v1087_v49 }
  0x2f   : >> { %984 = vmatpush3.bf16.msra.mxu1 %v1084_v46 }
  0x30   : >> { %985 = vmatprep.subr.bf16.mxu1 %v1085_v47  ;;  %963 = vmatpush3.bf16.msra.mxu0 %v1088_v50 }
  0x31   : >> { %1012 = vmatprep.subr.bf16.mxu0 %v1106_v9 }
  0x33   : >> { %986 = vmatpush3.bf16.msra.mxu1 %v1086_v48 }
  0x34   : >> { %987 = vmatprep.subr.bf16.mxu1 %v1087_v49 }
  0x37   : >> { %988 = vmatpush3.bf16.msra.mxu1 %v1088_v50  ;;  %v806_v50 = vld [vmem:[%s802_s18] sm:$0xf] }
  0x38   : >> { %1038 = vmatprep.subr.bf16.mxu1 %v1111_v20 }
  0x87   : >> { %v249_v51 = vpop.permute.xlu1 %248 }
  0x88   : >> { %v242_v52 = vpop.permute.xlu0 %241 }
  0x89   : >> { %v272_v57 = vsel %vm260_vm3, %v239_v35, %v242_v52 }
  0x8a   : >> { %v274_v62 = vsel %vm263_vm4, %v272_v57, %v249_v51 }
  0x8b   : >> { %v232_v53 = vpop.permute.xlu1 %231 }
  0x8c   : >> { %v520_v54 = vpop.permute.xlu0 %519 }
  0x8d   : >> { %v547_v5 = vsel %vm260_vm3, %v1230_v37, %v520_v54 }
  0x8f   : >> { %v225_v55 = vpop.permute.xlu1 %224 }
  0x90   : >> { %v222_v56 = vpop.permute.xlu0 %221 }
  0x91   : >> { %v262_v58 = vsel %vm260_vm3, %v1189_v15, %v222_v56 }
  0x92   : >> { %v265_v60 = vsel %vm263_vm4, %v262_v58, %v225_v55 }
  0x93   : >> { %v514_v59 = vpop.permute.xlu1 %513  ;;  %v268_v2 = vsel %vm266_vm5, %v265_v60, %v232_v53 }
  0x94   : >> { %v258_v61 = vpop.permute.xlu0 %257  ;;  %v539_v4 = vsel %vm260_vm3, %v1183_v14, %v514_v59 }
  0x95   : >> { %v276_v1 = vsel %vm266_vm5, %v274_v62, %v258_v61 }
  0x96   : >> { %457 = vmatprep.mubr.bf16.mxu0 %v276_v1 }
  0x97   : >> { %v516_v63 = vpop.permute.xlu1 %515  ;;  %458 = vmatmul.mubr.bf16.vlgmr.msra.gmra.mrb[0].mxu0 %v268_v2 }
  0x98   : >> { %1013 = vmatpush3.bf16.msra.mxu0 %v1169_v10  ;;  %v527_v3 = vpop.permute.xlu0 %526  ;;  %1016 = vmatprep.mubr.msk.bf16.mxu0 %vm1107_vm2, %v1106_v9  ;;  %v541_v13 = vsel %vm263_vm4, %v539_v4, %v516_v63 }
  0x99   : >> { %1014 = vmatprep.subr.bf16.mxu0 %v1106_v9  ;;  %v549_v12 = vsel %vm263_vm4, %v547_v5, %v527_v3 }
  0x9b   : >> { %v518_v6 = vpop.permute.xlu1 %517 }
  0x9c   : >> { %1015 = vmatpush3.bf16.msra.mxu0 %v1203_v24  ;;  %v536_v10 = vpop.permute.xlu0 %535  ;;  %v543_v16 = vsel %vm266_vm5, %v541_v13, %v518_v6 }
  0x9d   : >> { %v551_v15 = vsel %vm266_vm5, %v549_v12, %v536_v10  ;;  %1034 = vmatprep.subr.bf16.mxu0 %v1111_v20 }
  0x9e   : >> { %588 = vmatprep.mubr.bf16.mxu1 %v551_v15 }
  0x9f   : >> { %589 = vmatmul.mubr.bf16.vlgmr.msra.gmra.mrb[4].mxu1 %v543_v16  ;;  %1017 = vmatmul.mubr.msk.bf16.vlgmr.msra.gmra.mrb[4].mxu0 %vm260_vm3, %v537_v11 }
  0xa0   : >> { %1024 = vmatprep.mubr.msk.f32.mxu0 %vm1107_vm2, %v1106_v9  ;;  %1031 = vmatprep.mubr.msk.f32.mxu1 %vm1107_vm2, %v1106_v9 }
  0xed   : >> { %v500_v14 = vpop.f32.mrb[0].mxu1 }
  0xee   : >> { %v1010_v17 = vpop.f32.mrb[1].mxu1 }
  0xef   : >> { %v503_v18 = vpop.f32.mrb[2].mxu1 }
  0xf0   : >> { %v1011_v19 = vpop.f32.mrb[3].mxu1 }
 0x16a   : >> { %v964_v21 = vpop.f32.mrb[0].mxu0 }
 0x16b   : >> { %v965_v22 = vpop.f32.mrb[1].mxu0 }
 0x16c   : >> { %v966_v23 = vadd.f32 %v965_v22, %v964_v21  ;;  %v967_v24 = vpop.f32.mrb[2].mxu0 }
 0x16d   : >> { %v968_v25 = vpop.f32.mrb[3].mxu0 }
 0x16e   : >> { %v501_v26 = vadd.f32 %v966_v23, %v500_v14  ;;  %v969_v27 = vadd.f32 %v968_v25, %v967_v24 }
 0x170   : >> { %v504_v28 = vadd.f32 %v969_v27, %v503_v18 }
 0x172   : >> { %v989_v29 = vpop.f32.mrb[4].mxu1  ;;  %v631_v30 = vpop.f32.mrb[4].mxu0 }
 0x173   : >> { %v990_v31 = vpop.f32.mrb[5].mxu1  ;;  %v1018_v32 = vpop.f32.mrb[5].mxu0 }
 0x174   : >> { %v991_v9 = vadd.f32 %v990_v31, %v989_v29  ;;  %v992_v33 = vpop.f32.mrb[6].mxu1  ;;  %v634_v34 = vpop.f32.mrb[6].mxu0 }
 0x175   : >> { %v993_v35 = vpop.f32.mrb[7].mxu1  ;;  %v1019_v36 = vpop.f32.mrb[7].mxu0 }
 0x176   : >> { %v632_v37 = vadd.f32 %v991_v9, %v631_v30  ;;  %v994_v38 = vadd.f32 %v993_v35, %v992_v33 }
 0x178   : >> { %v638_v39 = vmax.f32 %v501_v26, %v632_v37  ;;  %v635_v40 = vadd.f32 %v994_v38, %v634_v34 }
 0x17a   : >> { %v639_v41 = vmax.f32 %v504_v28, %v635_v40 }
 0x17c   : >> { %v1035_v42 = vpack.c.bf16 %v639_v41, %v638_v39 }
 0x17e   : >> { %1037 = vmatpush3.bf16.msk.msra.mxu0 %vm1036_vm8, %v1035_v42  ;;  %1041 = vmatpush3.bf16.msk.msra.mxu1 %vm1036_vm8, %v1035_v42 }
 0x181   : >> { %1025 = vmatmul.mubr.msk.f32.vlgmr.msra.gmra.mrb[8].mxu0 %vm640_vm9, %v1156_v7  ;;  %1032 = vmatmul.mubr.msk.f32.vlgmr.msra.gmra.mrb[8].mxu1 %vm640_vm9, %v1158_v8 }
 0x254   : >> { %v714_v43 = vpop.f32.mrb[8].mxu0  ;;  %v787_v44 = vpop.f32.mrb[8].mxu1 }
 0x255   : >> { %v791_v45 = vmax.f32 %v714_v43, %v787_v44  ;;  %v1026_v46 = vpop.f32.mrb[9].mxu0  ;;  %v1033_v47 = vpop.f32.mrb[9].mxu1 }
 0x257   : >> { %v798_v48 = vadd.f32 %v1144_v0, %v791_v45 }
 0x258   : > { %189 = sbr.rel (!%p187_p4) target bundleno = 17 (0x11), region = 74 }
 0x259   : >> { %v799_v49 = vmax.f32 %v798_v48, 0.0 }
 0x25b   : >> { %v800_v51 = vpack.c.bf16 %v799_v49, %v799_v49 }
 0x25d   : >> { %v807_v52 = vsel %vm805_vm12, %v800_v51, %v806_v50 }
 0x25e   : >> { %808 = vst [vmem:[%s802_s18] sm:$0xf] %v807_v52 }
 0x25f PF: > { %s13_s12 = sadd.s32 1, %s1099_s12  }
 0x260   : > { %p10_p5 = scmp.ge.s32.totalorder %s13_s12, 4  }
 0x262   :  { %12 = sbr.rel (!%p10_p5) target bundleno = 1 (0x1), region = 85 }

// kernel: forward.9
= control target key start
LH: loop header
LB: loop body
LE: loop exit
PB: predicated region body
PF: predicated region fallthrough
CT: control target
= control target key end

     0   :  { %v230_v29 = vlaneseq  ;;  %v1702_v35 = vmov 1966171168   ;;  %s2077_s0 = inlined_call_operand.vmem [shape: bf16[2,1568], index: 0, kind: input, shape index: {}]   ;;  %s2078_s1 = inlined_call_operand.vmem [shape: bf16[1568,20], index: 1, kind: input, shape index: {}]   ;;  %s2079_s2 = inlined_call_operand.vmem [shape: f32[1,20], index: 2, kind: input, shape index: {}]   ;;  %s2080_s3 = inlined_call_operand.vmem [shape: f32[20,10], index: 3, kind: input, shape index: {}]   ;;  %s2081_s4 = inlined_call_operand.hbm [shape: f32[2,10], index: 4, kind: output, shape index: {}]  }
   0x1   :  { %v1574_v0 = vld [vmem:[%s2078_s1 + $0x40] sm:$0xff]   ;;  %v1578_v4 = vld [vmem:[%s2078_s1 + $0x48] sm:$0xff]   ;;  %v1582_v8 = vld [vmem:[%s2078_s1 + $0x50] sm:$0xff]   ;;  %v228_v36 = vunpack.c.l.s4 %v1702_v35 }
   0x2   :  { %v1575_v1 = vld [vmem:[%s2078_s1] sm:$0xff]   ;;  %1410 = vmatprep.subr.bf16.mxu0 %v1574_v0  ;;  %v1579_v5 = vld [vmem:[%s2078_s1 + $0x8] sm:$0xff]   ;;  %v1583_v9 = vld [vmem:[%s2078_s1 + $0x10] sm:$0xff]   ;;  %v231_v33 = vshrl.u32 %v230_v29, 7 }
   0x3   :  { %v1576_v2 = vld [vmem:[%s2078_s1 + $0xc0] sm:$0xff]   ;;  %1411 = vmatpush3.bf16.msra.mxu0 %v1575_v1  ;;  %v1580_v6 = vld [vmem:[%s2078_s1 + $0xc8] sm:$0xff]   ;;  %v1584_v10 = vld [vmem:[%s2078_s1 + $0xd0] sm:$0xff]   ;;  %v229_v39 = vunpack.c.0.s8 %v228_v36 }
   0x4   :  { %v1577_v3 = vld [vmem:[%s2078_s1 + $0x80] sm:$0xff]   ;;  %1432 = vmatprep.subr.bf16.mxu1 %v1576_v2  ;;  %1412 = vmatprep.subr.bf16.mxu0 %v1578_v4  ;;  %v1581_v7 = vld [vmem:[%s2078_s1 + $0x88] sm:$0xff]   ;;  %v1585_v11 = vld [vmem:[%s2078_s1 + $0x90] sm:$0xff]  }
   0x5   :  { %1433 = vmatpush3.bf16.msra.mxu1 %v1577_v3  ;;  %v1586_v12 = vld [vmem:[%s2078_s1 + $0x58] sm:$0xff]   ;;  %v1590_v16 = vld [vmem:[%s2078_s1 + $0x60] sm:$0xff]   ;;  %v1594_v20 = vld [vmem:[%s2078_s1 + $0x68] sm:$0xff]   ;;  %v1837_v41 = vsub.s32 %v229_v39, %v231_v33 }
   0x6   :  { %1434 = vmatprep.subr.bf16.mxu1 %v1580_v6  ;;  %v1587_v13 = vld [vmem:[%s2078_s1 + $0x18] sm:$0xff]   ;;  %v1591_v17 = vld [vmem:[%s2078_s1 + $0x20] sm:$0xff]   ;;  %v1595_v21 = vld [vmem:[%s2078_s1 + $0x28] sm:$0xff]  }
   0x7   :  { %1413 = vmatpush3.bf16.msra.mxu0 %v1579_v5  ;;  %v1588_v14 = vld [vmem:[%s2078_s1 + $0xd8] sm:$0xff]   ;;  %v1592_v18 = vld [vmem:[%s2078_s1 + $0xe0] sm:$0xff]   ;;  %v1596_v22 = vld [vmem:[%s2078_s1 + $0xe8] sm:$0xff]  }
   0x8   :  { %1414 = vmatprep.subr.bf16.mxu0 %v1582_v8  ;;  %v1589_v15 = vld [vmem:[%s2078_s1 + $0x98] sm:$0xff]   ;;  %v1593_v19 = vld [vmem:[%s2078_s1 + $0xa0] sm:$0xff]   ;;  %v1597_v23 = vld [vmem:[%s2078_s1 + $0xa8] sm:$0xff]  }
   0x9   :  { %1435 = vmatpush3.bf16.msra.mxu1 %v1581_v7  ;;  %v1598_v24 = vld [vmem:[%s2078_s1 + $0x70] sm:$0xff]   ;;  %v1602_v28 = vld [vmem:[%s2078_s1 + $0x78] sm:$0xff]   ;;  %v1607_v34 = vld [vmem:[%s2078_s1 + $0x140] sm:$0xff]  }
   0xa   :  { %1436 = vmatprep.subr.bf16.mxu1 %v1584_v10  ;;  %v1599_v25 = vld [vmem:[%s2078_s1 + $0x30] sm:$0xff]   ;;  %v1603_v30 = vld [vmem:[%s2078_s1 + $0x38] sm:$0xff]   ;;  %v19_v37 = vld [vmem:[%s2077_s0] sm:$0xff] }
   0xb   :  { %1415 = vmatpush3.bf16.msra.mxu0 %v1583_v9  ;;  %v1600_v26 = vld [vmem:[%s2078_s1 + $0xf0] sm:$0xff]   ;;  %v1604_v31 = vld [vmem:[%s2078_s1 + $0xf8] sm:$0xff]   ;;  %v226_v38 = vcombine.high %v19_v37, %v19_v37  ;;  %v1609_v40 = vld [vmem:[%s2078_s1 + $0x1c0] sm:$0xff]   ;;  %v233_v42 = vrot.slane %v19_v37, %v1837_v41 }
   0xc   :  { %1416 = vmatprep.subr.bf16.mxu0 %v1586_v12  ;;  %v1601_v27 = vld [vmem:[%s2078_s1 + $0xb0] sm:$0xff]   ;;  %v1605_v32 = vld [vmem:[%s2078_s1 + $0xb8] sm:$0xff]   ;;  %v1608_v48 = vld [vmem:[%s2078_s1 + $0x100] sm:$0xff]  }
   0xd   :  { %1437 = vmatpush3.bf16.msra.mxu1 %v1585_v11  ;;  %v1841_v43 = vrot.slane %v226_v38, %v1837_v41  ;;  %v241_v44 = vcombine.high %v233_v42, %v233_v42  ;;  %v249_v45 = vrot.slane %v233_v42, %v1837_v41  ;;  %v1611_v51 = vld [vmem:[%s2078_s1 + $0x148] sm:$0xff]   ;;  %v1610_v53 = vld [vmem:[%s2078_s1 + $0x180] sm:$0xff]   ;;  %v1615_v57 = vld [vmem:[%s2078_s1 + $0x150] sm:$0xff]  }
   0xe   :  { %1438 = vmatprep.subr.bf16.mxu1 %v1588_v14  ;;  %v1613_v54 = vld [vmem:[%s2078_s1 + $0x1c8] sm:$0xff]   ;;  %v1617_v59 = vld [vmem:[%s2078_s1 + $0x1d0] sm:$0xff]   ;;  %v1619_v61 = vld [vmem:[%s2078_s1 + $0x158] sm:$0xff]  }
   0xf   :  { %1417 = vmatpush3.bf16.msra.mxu0 %v1587_v13  ;;  %v242_v46 = vcombine.high %v1841_v43, %v1841_v43  ;;  %v263_v47 = vrot.slane %v241_v44, %v1837_v41  ;;  %v271_v50 = vcombine.high %v249_v45, %v249_v45  ;;  %v1612_v56 = vld [vmem:[%s2078_s1 + $0x108] sm:$0xff]   ;;  %v1616_v60 = vld [vmem:[%s2078_s1 + $0x110] sm:$0xff]   ;;  %v1621_v63 = vld [vmem:[%s2078_s1 + $0x1d8] sm:$0xff]  }
  0x10   :  { %1418 = vmatprep.subr.bf16.mxu0 %v1590_v16  ;;  %v1614_v58 = vld [vmem:[%s2078_s1 + $0x188] sm:$0xff]   ;;  %v1618_v62 = vld [vmem:[%s2078_s1 + $0x190] sm:$0xff]   ;;  %v1620_v0 = vld [vmem:[%s2078_s1 + $0x118] sm:$0xff]  }
  0x11   :  { %1439 = vmatpush3.bf16.msra.mxu1 %v1589_v15  ;;  %v270_v49 = vrot.slane %v242_v46, %v1837_v41  ;;  %950 = vmatprep.mubr.bf16.mxu0 %v263_v47  ;;  %v273_v52 = vcombine.high %v263_v47, %v263_v47  ;;  %v1623_v1 = vld [vmem:[%s2078_s1 + $0x160] sm:$0xff]   ;;  %v1622_v2 = vld [vmem:[%s2078_s1 + $0x198] sm:$0xff]   ;;  %v1627_v5 = vld [vmem:[%s2078_s1 + $0x168] sm:$0xff]  }
  0x12   :  { %1440 = vmatprep.subr.bf16.mxu1 %v1592_v18  ;;  %v1625_v3 = vld [vmem:[%s2078_s1 + $0x1e0] sm:$0xff]   ;;  %v1629_v7 = vld [vmem:[%s2078_s1 + $0x1e8] sm:$0xff]   ;;  %v1631_v9 = vld [vmem:[%s2078_s1 + $0x170] sm:$0xff]  }
  0x13   :  { %1419 = vmatpush3.bf16.msra.mxu0 %v1591_v17  ;;  %v274_v55 = vcombine.high %v270_v49, %v270_v49  ;;  %990 = vmatprep.mubr.bf16.mxu1 %v273_v52  ;;  %v1624_v4 = vld [vmem:[%s2078_s1 + $0x120] sm:$0xff]   ;;  %v1628_v8 = vld [vmem:[%s2078_s1 + $0x128] sm:$0xff]   ;;  %v1633_v11 = vld [vmem:[%s2078_s1 + $0x1f0] sm:$0xff]   ;;  %v256_v17 = vrot.slane %v1841_v43, %v1837_v41 }
  0x14   :  { %1420 = vmatprep.subr.bf16.mxu0 %v1594_v20  ;;  %v1626_v6 = vld [vmem:[%s2078_s1 + $0x1a0] sm:$0xff]   ;;  %v1630_v10 = vld [vmem:[%s2078_s1 + $0x1a8] sm:$0xff]   ;;  %v1632_v12 = vld [vmem:[%s2078_s1 + $0x130] sm:$0xff]  }
  0x15   :  { %1441 = vmatpush3.bf16.msra.mxu1 %v1593_v19  ;;  %v1635_v13 = vld [vmem:[%s2078_s1 + $0x178] sm:$0xff]   ;;  %v1634_v14 = vld [vmem:[%s2078_s1 + $0x1b0] sm:$0xff]   ;;  %v1639_v18 = vld [vmem:[%s2078_s1 + $0x240] sm:$0xff]  }
  0x16   :  { %1442 = vmatprep.subr.bf16.mxu1 %v1596_v22  ;;  %v1637_v15 = vld [vmem:[%s2078_s1 + $0x1f8] sm:$0xff]   ;;  %v1641_v20 = vld [vmem:[%s2078_s1 + $0x2c0] sm:$0xff]   ;;  %v272_v22 = vcombine.high %v256_v17, %v256_v17  ;;  %v1649_v29 = vld [vmem:[%s2078_s1 + $0x2d0] sm:$0xff]  }
  0x17   :  { %1421 = vmatpush3.bf16.msra.mxu0 %v1595_v21  ;;  %v1636_v16 = vld [vmem:[%s2078_s1 + $0x138] sm:$0xff]   ;;  %v1640_v21 = vld [vmem:[%s2078_s1 + $0x200] sm:$0xff]   ;;  %v1659_v39 = vld [vmem:[%s2078_s1 + $0x268] sm:$0xff]  }
  0x18   :  { %1422 = vmatprep.subr.bf16.mxu0 %v1598_v24  ;;  %v1638_v19 = vld [vmem:[%s2078_s1 + $0x1b8] sm:$0xff]   ;;  %v1642_v24 = vld [vmem:[%s2078_s1 + $0x280] sm:$0xff]   ;;  %v1661_v42 = vld [vmem:[%s2078_s1 + $0x2e8] sm:$0xff]  }
  0x19   :  { %1443 = vmatpush3.bf16.msra.mxu1 %v1597_v23  ;;  %v1643_v23 = vld [vmem:[%s2078_s1 + $0x248] sm:$0xff]   ;;  %v1653_v33 = vld [vmem:[%s2078_s1 + $0x2d8] sm:$0xff]   ;;  %v1655_v35 = vld [vmem:[%s2078_s1 + $0x260] sm:$0xff]  }
  0x1a   :  { %1444 = vmatprep.subr.bf16.mxu1 %v1600_v26  ;;  %v1644_v26 = vld [vmem:[%s2078_s1 + $0x208] sm:$0xff]   ;;  %v1654_v36 = vld [vmem:[%s2078_s1 + $0x298] sm:$0xff]   ;;  %v1657_v37 = vld [vmem:[%s2078_s1 + $0x2e0] sm:$0xff]  }
  0x1b   :  { %1423 = vmatpush3.bf16.msra.mxu0 %v1599_v25  ;;  %v1645_v25 = vld [vmem:[%s2078_s1 + $0x2c8] sm:$0xff]   ;;  %v1656_v38 = vld [vmem:[%s2078_s1 + $0x220] sm:$0xff]   ;;  %v1663_v44 = vld [vmem:[%s2078_s1 + $0x270] sm:$0xff]  }
  0x1c   :  { %1424 = vmatprep.subr.bf16.mxu0 %v1602_v28  ;;  %v1646_v28 = vld [vmem:[%s2078_s1 + $0x288] sm:$0xff]  }
  0x1d   :  { %1445 = vmatpush3.bf16.msra.mxu1 %v1601_v27  ;;  %v1647_v27 = vld [vmem:[%s2078_s1 + $0x250] sm:$0xff]   ;;  %v1660_v43 = vld [vmem:[%s2078_s1 + $0x228] sm:$0xff]  }
  0x1e   :  { %1446 = vmatprep.subr.bf16.mxu1 %v1604_v31  ;;  %v1651_v31 = vld [vmem:[%s2078_s1 + $0x258] sm:$0xff]   ;;  %v1662_v46 = vld [vmem:[%s2078_s1 + $0x2a8] sm:$0xff]  }
  0x1f   :  { %1425 = vmatpush3.bf16.msra.mxu0 %v1603_v30  ;;  %v1648_v30 = vld [vmem:[%s2078_s1 + $0x210] sm:$0xff]  }
  0x20   :  { %1454 = vmatprep.subr.bf16.mxu0 %v1607_v34  ;;  %v1652_v34 = vld [vmem:[%s2078_s1 + $0x218] sm:$0xff]  }
  0x21   :  { %1447 = vmatpush3.bf16.msra.mxu1 %v1605_v32  ;;  %v1650_v32 = vld [vmem:[%s2078_s1 + $0x290] sm:$0xff]  }
  0x22   :  { %1476 = vmatprep.subr.bf16.mxu1 %v1609_v40  ;;  %951 = vmatmul.mubr.bf16.vlgmr.msra.gmra.mrb[0].mxu0 %v249_v45  ;;  %v1658_v40 = vld [vmem:[%s2078_s1 + $0x2a0] sm:$0xff]   ;;  %v20_v45 = vld [vmem:[%s2077_s0 + $0x8] sm:$0x1f] }
  0x23   :  { %1455 = vmatpush3.bf16.msra.mxu0 %v1608_v48  ;;  %1030 = vmatprep.mubr.bf16.mxu0 %v270_v49  ;;  %v282_v47 = vrot.slane %v20_v45, %v1837_v41  ;;  %v1665_v48 = vld [vmem:[%s2078_s1 + $0x2f0] sm:$0xff]  }
  0x24   :  { %991 = vmatmul.mubr.bf16.vlgmr.msra.gmra.mrb[0].mxu1 %v271_v50  ;;  %1456 = vmatprep.subr.bf16.mxu0 %v1611_v51 }
  0x25   :  { %1477 = vmatpush3.bf16.msra.mxu1 %v1610_v53  ;;  %1070 = vmatprep.mubr.bf16.mxu1 %v274_v55 }
  0x26   :  { %1478 = vmatprep.subr.bf16.mxu1 %v1613_v54 }
  0x27   :  { %1457 = vmatpush3.bf16.msra.mxu0 %v1612_v56 }
  0x28   :  { %1458 = vmatprep.subr.bf16.mxu0 %v1615_v57 }
  0x29   :  { %1479 = vmatpush3.bf16.msra.mxu1 %v1614_v58 }
  0x2a   :  { %1480 = vmatprep.subr.bf16.mxu1 %v1617_v59 }
  0x2b   :  { %1459 = vmatpush3.bf16.msra.mxu0 %v1616_v60 }
  0x2c   :  { %1460 = vmatprep.subr.bf16.mxu0 %v1619_v61 }
  0x2d   :  { %1481 = vmatpush3.bf16.msra.mxu1 %v1618_v62 }
  0x2e   :  { %1482 = vmatprep.subr.bf16.mxu1 %v1621_v63 }
  0x2f   :  { %1461 = vmatpush3.bf16.msra.mxu0 %v1620_v0 }
  0x30   :  { %1462 = vmatprep.subr.bf16.mxu0 %v1623_v1 }
  0x31   :  { %1483 = vmatpush3.bf16.msra.mxu1 %v1622_v2 }
  0x32   :  { %1484 = vmatprep.subr.bf16.mxu1 %v1625_v3 }
  0x33   :  { %1463 = vmatpush3.bf16.msra.mxu0 %v1624_v4 }
  0x34   :  { %1464 = vmatprep.subr.bf16.mxu0 %v1627_v5 }
  0x35   :  { %1485 = vmatpush3.bf16.msra.mxu1 %v1626_v6 }
  0x36   :  { %1486 = vmatprep.subr.bf16.mxu1 %v1629_v7 }
  0x37   :  { %1465 = vmatpush3.bf16.msra.mxu0 %v1628_v8 }
  0x38   :  { %1466 = vmatprep.subr.bf16.mxu0 %v1631_v9 }
  0x39   :  { %1487 = vmatpush3.bf16.msra.mxu1 %v1630_v10 }
  0x3a   :  { %1488 = vmatprep.subr.bf16.mxu1 %v1633_v11 }
  0x3b   :  { %1467 = vmatpush3.bf16.msra.mxu0 %v1632_v12 }
  0x3c   :  { %1468 = vmatprep.subr.bf16.mxu0 %v1635_v13 }
  0x3d   :  { %1489 = vmatpush3.bf16.msra.mxu1 %v1634_v14 }
  0x3e   :  { %1490 = vmatprep.subr.bf16.mxu1 %v1637_v15 }
  0x3f   :  { %1469 = vmatpush3.bf16.msra.mxu0 %v1636_v16 }
  0x40   :  { %1498 = vmatprep.subr.bf16.mxu0 %v1639_v18 }
  0x41   :  { %1491 = vmatpush3.bf16.msra.mxu1 %v1638_v19 }
  0x42   :  { %1031 = vmatmul.mubr.bf16.vlgmr.msra.gmra.mrb[4].mxu0 %v256_v17  ;;  %1520 = vmatprep.subr.bf16.mxu1 %v1641_v20 }
  0x43   :  { %1499 = vmatpush3.bf16.msra.mxu0 %v1640_v21 }
  0x44   :  { %1071 = vmatmul.mubr.bf16.vlgmr.msra.gmra.mrb[4].mxu1 %v272_v22  ;;  %1500 = vmatprep.subr.bf16.mxu0 %v1643_v23 }
  0x45   :  { %1521 = vmatpush3.bf16.msra.mxu1 %v1642_v24 }
  0x46   :  { %1522 = vmatprep.subr.bf16.mxu1 %v1645_v25 }
  0x47   :  { %1501 = vmatpush3.bf16.msra.mxu0 %v1644_v26 }
  0x48   :  { %1502 = vmatprep.subr.bf16.mxu0 %v1647_v27 }
  0x49   :  { %1523 = vmatpush3.bf16.msra.mxu1 %v1646_v28 }
  0x4a   :  { %1524 = vmatprep.subr.bf16.mxu1 %v1649_v29 }
  0x4b   :  { %1503 = vmatpush3.bf16.msra.mxu0 %v1648_v30 }
  0x4c   :  { %1504 = vmatprep.subr.bf16.mxu0 %v1651_v31 }
  0x4d   :  { %1525 = vmatpush3.bf16.msra.mxu1 %v1650_v32 }
  0x4e   :  { %1526 = vmatprep.subr.bf16.mxu1 %v1653_v33 }
  0x4f   :  { %1505 = vmatpush3.bf16.msra.mxu0 %v1652_v34 }
  0x50   :  { %1506 = vmatprep.subr.bf16.mxu0 %v1655_v35 }
  0x51   :  { %1527 = vmatpush3.bf16.msra.mxu1 %v1654_v36 }
  0x52   :  { %1528 = vmatprep.subr.bf16.mxu1 %v1657_v37 }
  0x53   :  { %1507 = vmatpush3.bf16.msra.mxu0 %v1656_v38 }
  0x54   :  { %1508 = vmatprep.subr.bf16.mxu0 %v1659_v39 }
  0x55   :  { %1529 = vmatpush3.bf16.msra.mxu1 %v1658_v40 }
  0x56   :  { %1530 = vmatprep.subr.bf16.mxu1 %v1661_v42 }
  0x57   :  { %9 = vsyncpa [#allocation3], 0  ;;  %1509 = vmatpush3.bf16.msra.mxu0 %v1660_v43  ;;  %v1664_v49 = vld [vmem:[%s2078_s1 + $0x230] sm:$0xff]   ;;  %v290_v50 = vcombine.high %v282_v47, %v282_v47  ;;  %v1667_v51 = vld [vmem:[%s2078_s1 + $0x278] sm:$0xff]   ;;  %v297_v57 = vrot.slane %v282_v47, %v1837_v41  ;;  %v275_v59 = vcombine.high %v20_v45, %v20_v45  ;;  %v1703_v61 = vmov 0.0  }
  0x58   :  { %1510 = vmatprep.subr.bf16.mxu0 %v1663_v44  ;;  %v1666_v52 = vld [vmem:[%s2078_s1 + $0x2b0] sm:$0xff]   ;;  %v1669_v54 = vld [vmem:[%s2078_s1 + $0x2f8] sm:$0xff]   ;;  %v1672_v60 = vld [vmem:[%s2078_s1 + $0x300] sm:$0xff]   ;;  %vm1704_vm0 = vmmov 0   ;;  %vm914_vm1 = vcmask 261120   ;;  %v1705_v4 = vmov 0.0|0.0  }
  0x59   :  { %1531 = vmatpush3.bf16.msra.mxu1 %v1662_v46  ;;  %v311_v53 = vrot.slane %v290_v50, %v1837_v41  ;;  %v1668_v55 = vld [vmem:[%s2078_s1 + $0x238] sm:$0xff]   ;;  %v312_v62 = vcombine.high %v297_v57, %v297_v57  ;;  %v289_v63 = vrot.slane %v275_v59, %v1837_v41  ;;  %v1673_v0 = vld [vmem:[%s2078_s1 + $0x308] sm:$0xff]   ;;  %v1199_v2 = vld [vmem:[%s2080_s3] sm:$0xff]  ;;  %vm1206_vm2 = vcmask 1043456  }
  0x5a   :  { %1532 = vmatprep.subr.bf16.mxu1 %v1665_v48  ;;  %v1670_v58 = vld [vmem:[%s2078_s1 + $0x2b8] sm:$0xff]   ;;  %v1200_v3 = vld [vmem:[%s2080_s3 + $0x8] sm:$0xff]  ;;  %v1308_v7 = vld [vmem:[%s2079_s2] ss:$0 sm:$0xff]  ;;  %vm1202_vm3 = vcmask 162816   ;;  %vm1280_vm4 = vcmask 74752  }
  0x5b   :  { %1511 = vmatpush3.bf16.msra.mxu0 %v1664_v49  ;;  %1110 = vmatprep.mubr.bf16.mxu0 %v311_v53  ;;  %v313_v56 = vcombine.high %v311_v53, %v311_v53  ;;  %v304_v1 = vrot.slane %v289_v63, %v1837_v41  ;;  %v1567_v5 = vpack.c.bf16 %v1200_v3, %v1199_v2  ;;  %v1201_v41 = vld [vmem:[%s2080_s3 + $0x10] sm:$0xf]  ;;  %s1706_s2 = smov [#allocation2]  }
  0x5c   :  { %1512 = vmatprep.subr.bf16.mxu0 %v1667_v51  ;;  %s1300_s3 = sshll.u32 %s1706_s2, 4  ;;  %s1301_s3 = int_to_ptr.vmem [resolvable:$true] %s1300_s3 }
  0x5d   :  { %1533 = vmatpush3.bf16.msra.mxu1 %v1666_v52  ;;  %1150 = vmatprep.mubr.bf16.mxu1 %v313_v56  ;;  %s1678_s13 = scalar_lea.vmem %s1301_s3, 32  ;;  %p1683_p1 = scmp.lt.s32.totalorder %s1301_s3, %s1301_s3 }
  0x5e   :  { %1534 = vmatprep.subr.bf16.mxu1 %v1669_v54  ;;  %p1679_p0 = scmp.ne.s32.totalorder %s1301_s3, %s1678_s13  ;;  %p1684_p2 = scmp.lt.s32.totalorder %s1678_s13, %s1678_s13 }
  0x5f   :  { %1513 = vmatpush3.bf16.msra.mxu0 %v1668_v55 }
  0x60   :  { %1549 = vmatprep.subr.bf16.mxu0 %v1703_v61  ;;  %p1685_p3 = por %p1684_p2, %p1683_p1 }
  0x61   :  { %1535 = vmatpush3.bf16.msra.mxu1 %v1670_v58 }
  0x62   :  { %1111 = vmatmul.mubr.bf16.vlgmr.msra.gmra.mrb[8].mxu0 %v297_v57  ;;  %1566 = vmatprep.subr.bf16.mxu1 %v1705_v4  ;;  %p1686_p4 = pnand %p1685_p3, %p1679_p0 }
  0x63   :  { %1550 = vmatpush3.bf16.msra.mxu0 %v1672_v60  ;;  %1553 = vmatprep.mubr.msk.bf16.mxu0 %vm1704_vm0, %v1703_v61 }
  0x64   :  { %1151 = vmatmul.mubr.bf16.vlgmr.msra.gmra.mrb[8].mxu1 %v312_v62  ;;  %1551 = vmatprep.subr.bf16.mxu0 %v1703_v61 }
  0x65   :  { %1563 = vmatprep.mubr.msk.f32.mxu1 %vm1704_vm0, %v1703_v61  ;;  %1568 = vmatpush3.bf16.msra.mxu1 %v1567_v5 }
  0x66   :  { %1561 = vmatprep.subr.mxu1 %v1703_v61 }
  0x67   :  { %1552 = vmatpush3.bf16.msra.mxu0 %v1673_v0 }
  0x69   :  { %1562 = vmatpush3.msk.msra.mxu1 %vm1206_vm2, %v1201_v41 }
  0x6a   :  { %1554 = vmatmul.mubr.msk.bf16.vlgmr.msra.gmra.mrb[12].mxu0 %vm914_vm1, %v304_v1 }
  0xf5   :  { %v1426_v6 = vpop.f32.mrb[0].mxu0 }
  0xf6   :  { %v1427_v8 = vpop.f32.mrb[1].mxu0 }
  0xf7   :  { %v1428_v9 = vadd.f32 %v1427_v8, %v1426_v6  ;;  %v1429_v10 = vpop.f32.mrb[2].mxu0  ;;  %v1448_v11 = vpop.f32.mrb[0].mxu1 }
  0xf8   :  { %v1430_v12 = vpop.f32.mrb[3].mxu0  ;;  %v1449_v13 = vpop.f32.mrb[1].mxu1 }
  0xf9   :  { %v953_v14 = vadd.f32 %v1428_v9, %v1308_v7  ;;  %v1450_v15 = vadd.f32 %v1449_v13, %v1448_v11  ;;  %v1451_v16 = vpop.f32.mrb[2].mxu1 }
  0xfa   :  { %v1452_v17 = vpop.f32.mrb[3].mxu1 }
  0xfb   :  { %v993_v18 = vadd.f32 %v1450_v15, %v953_v14 }
 0x115   :  { %v1470_v19 = vpop.f32.mrb[4].mxu0 }
 0x116   :  { %v1471_v20 = vpop.f32.mrb[5].mxu0 }
 0x117   :  { %v1472_v21 = vadd.f32 %v1471_v20, %v1470_v19  ;;  %v1473_v22 = vpop.f32.mrb[6].mxu0  ;;  %v1492_v23 = vpop.f32.mrb[4].mxu1 }
 0x118   :  { %v1474_v24 = vpop.f32.mrb[7].mxu0  ;;  %v1493_v25 = vpop.f32.mrb[5].mxu1 }
 0x119   :  { %v1033_v26 = vadd.f32 %v1472_v21, %v993_v18  ;;  %v1494_v27 = vadd.f32 %v1493_v25, %v1492_v23  ;;  %v1495_v28 = vpop.f32.mrb[6].mxu1 }
 0x11a   :  { %v1496_v29 = vpop.f32.mrb[7].mxu1 }
 0x11b   :  { %v1073_v30 = vadd.f32 %v1494_v27, %v1033_v26 }
 0x135   :  { %v1514_v31 = vpop.f32.mrb[8].mxu0 }
 0x136   :  { %v1515_v32 = vpop.f32.mrb[9].mxu0 }
 0x137   :  { %v1516_v33 = vadd.f32 %v1515_v32, %v1514_v31  ;;  %v1536_v34 = vpop.f32.mrb[8].mxu1  ;;  %v1517_v35 = vpop.f32.mrb[10].mxu0 }
 0x138   :  { %v1537_v36 = vpop.f32.mrb[9].mxu1  ;;  %v1518_v37 = vpop.f32.mrb[11].mxu0 }
 0x139   :  { %v1113_v38 = vadd.f32 %v1516_v33, %v1073_v30  ;;  %v1538_v39 = vadd.f32 %v1537_v36, %v1536_v34  ;;  %v1539_v40 = vpop.f32.mrb[10].mxu1 }
 0x13a   :  { %v1540_v42 = vpop.f32.mrb[11].mxu1 }
 0x13b   :  { %v1153_v43 = vadd.f32 %v1538_v39, %v1113_v38 }
 0x13d   :  { %v1192_v44 = vpop.f32.mrb[12].mxu0 }
 0x13e   :  { %v1193_v45 = vadd.f32 %v1192_v44, %v1153_v43  ;;  %v1555_v46 = vpop.f32.mrb[13].mxu0 }
 0x13f   :  { %v1195_v47 = vpop.f32.mrb[14].mxu0 }
 0x140   :  { %v1198_v48 = vmax.f32 %v1193_v45, 0.0  ;;  %v1556_v49 = vpop.f32.mrb[15].mxu0 }
 0x142   :  { %1564 = vmatmul.mubr.msk.f32.vlgmr.msra.gmra.mrb[12].mxu1 %vm1202_vm3, %v1198_v48 }
 0x215   :  { %v1276_v50 = vpop.f32.mrb[12].mxu1 }
 0x216   :  { %v1565_v51 = vpop.f32.mrb[13].mxu1  ;;  %v1281_v52 = vsel %vm1280_vm4, %v1276_v50, -inf }
 0x217   :  { %1282 = vmax.xlane.f32.xlu0 %v1281_v52 }
 0x2a4   :  { %v1283_v53 = vpop.xlane.xlu0 %1282 }
 0x2a5   :  { %v1284_v54 = vsub.f32 %v1276_v50, %v1283_v53 }
 0x2a7   :  { %v1285_v55 = vmul.f32 1.442695, %v1284_v54 }
 0x2a9   :  { %1674 = vpow2.f32 %v1285_v55 }
 0x2b3   :  { %v1675_v56 = vpop.eup %1674 }
 0x2b4   :  { %v1287_v57 = vsel %vm1280_vm4, %v1675_v56, 0.0 }
 0x2b5   :  { %1288 = vadd.xlane.f32.xlu0 %v1287_v57 }
 0x342   :  { %v1289_v58 = vpop.xlane.xlu0 %1288 }
 0x343   :  { %1676 = vlog2.f32 %v1289_v58 }
 0x34d   :  { %v1677_v59 = vpop.eup %1676 }
 0x34e   :  { %v1291_v60 = vmul.f32 0.6931472, %v1677_v59 }
 0x350   :  { %v1292_v61 = vsub.f32 %v1284_v54, %v1291_v60 }
 0x352   :  { %1293 = vst.msk [vmem:[#allocation2] sm:$0x3] %vm1280_vm4, %v1292_v61 }
 0x353   :  { %1689 = shalt.err (!%p1686_p4)
}
 0x354   :  { %s1690_s16 = scalar_lea.hbm %s2081_s4, 32 }
 0x355   :  { %p1691_p5 = scmp.ne.s32.totalorder %s2081_s4, %s1690_s16  ;;  %p1694_p6 = scmp.lt.u32.totalorder %s1690_s16, %s2081_s4 }
 0x357   :  { %p1696_p7 = pnand %p1694_p6, %p1691_p5 }
 0x359   :  { %1699 = shalt.err (!%p1696_p7)
}
 0x35a   :  { %1303 = dma.vmem_to_hbm [thread:$0]  %s1301_s3, 32, %s2081_s4, [#allocation3]  }
 0x35b   :  { %1700 = dma.done.wait [#allocation3], 32  }
 0x35c   :  { %1701 = vsyncadd [#allocation3], 4294967264 }
 0x35d   :  { %1307 = vsyncpa [#allocation3], 1 }

</bundles_post_ra>
